<compile_context>
chip_gen: v7x
topology: tpu7x:2x2x1
jax: 0.10.0
libtpu: 0.0.40
codegen_flags: <defaults>
</compile_context>

<pallas_src>
import functools

import jax
import jax.numpy as jnp
from jax.experimental import pallas as pl
from jax.experimental.pallas import tpu as pltpu


def _mha_kernel(apply_dropout, bb, S,
                x2_ref, x3_ref, x4_ref,
                wq_ref, bq_ref, wk_ref, bk_ref, wv_ref, bv_ref,
                *rest):
    if apply_dropout:
        mask_ref, out_ref = rest
    else:
        (out_ref,) = rest
        mask_ref = None

    # v9 = self.query(x2); the 1/x8 scale (v12) is pre-folded into wq/bq.
    q = jnp.dot(x2_ref[...], wq_ref[...],
                preferred_element_type=jnp.float32) + bq_ref[...]        # (B2, DH) f32

    # v10 / v15: key & value projections fused over all bb kv-batches:
    # one (bb*S, DK) @ (DK, DH) MXU op per projection, one bias broadcast.
    dk = x3_ref.shape[-1]
    x3_flat = x3_ref[...].reshape(bb * S, dk)
    x4_flat = x4_ref[...].reshape(bb * S, dk)
    k_all = jnp.dot(x3_flat, wk_ref[...],
                    preferred_element_type=jnp.float32) + bk_ref[...]    # (bb*S, DH) f32
    v_all = jnp.dot(x4_flat, wv_ref[...],
                    preferred_element_type=jnp.float32) + bv_ref[...]    # (bb*S, DV) f32

    # v11 / v12: scores for all bb kv-batches in one MXU op -> (B2, bb*S).
    scores = jax.lax.dot_general(
        q, k_all, (((1,), (1,)), ((), ())),
        preferred_element_type=jnp.float32)

    # v13 = softmax(v12, dim=1): dim=1 of (B3, B2, S) is the query-batch axis,
    # i.e. axis 0 of this tile; it is a per-column softmax, so batching the
    # columns of all bb kv-batches together is exact.
    m = jnp.max(scores, axis=0, keepdims=True)
    e = jnp.exp(scores - m)
    p = e * pl.reciprocal(jnp.sum(e, axis=0, keepdims=True), approx=True)

    # v14 = dropout(v13): single multiply by the precomputed keep/(1-p) mask,
    # laid out (B2, bb*S) to match the batched score tile.
    if apply_dropout:
        p = p * mask_ref[...].astype(jnp.float32)

    # v16 = v14 @ v15 per kv-batch -> (B2, DV); 128-aligned static slices.
    for bi in range(bb):
        out_ref[bi] = jnp.dot(
            p[:, bi * S:(bi + 1) * S], v_all[bi * S:(bi + 1) * S, :],
            preferred_element_type=jnp.float32).astype(out_ref.dtype)


def _default_block_b(B3):
    """v7x has 2 TensorCores/chip -> split the kv-batch into 2 'parallel'
    grid steps so both participate; v5e/v6e have 1 TC -> keep grid=(1,)."""
    try:
        kind = jax.devices()[0].device_kind.lower()
    except Exception:
        return B3
    if ("v7" in kind or "tpu7" in kind) and B3 >= 2 and B3 % 2 == 0:
        return B3 // 2
    return B3


def mha_forward(x2, x3, x4, x5, x6, x7, x8, params, seed=0, block_b=None,
                compute_dtype=jnp.bfloat16):
    """Mirrors MHA.forward(x2, x3, x4, x5, x6, x7, x8).  x7 is a dead arg."""
    del x7
    wq_t, bq, wk_t, bk, wv_t, bv = params
    B2, DQ = x2.shape
    B3, S, DK = x3.shape
    DH = wq_t.shape[1]
    DV = wv_t.shape[1]

    # v12: fold the 1/x8 divide into the query projection once (wrapper-side).
    inv_scale = 1.0 / float(x8)
    wq_s = wq_t * inv_scale
    bq_s = bq * inv_scale

    # bf16 inputs/weights halve the dominant HBM->VMEM DMA bytes; all dots
    # accumulate in f32 (preferred_element_type), biases and output stay f32.
    x2_c = x2.astype(compute_dtype)
    x3_c = x3.astype(compute_dtype)
    x4_c = x4.astype(compute_dtype)
    wq_c = wq_s.astype(compute_dtype)
    wk_c = wk_t.astype(compute_dtype)
    wv_c = wv_t.astype(compute_dtype)
    bq_f = bq_s.astype(jnp.float32)
    bk_f = bk.astype(jnp.float32)
    bv_f = bv.astype(jnp.float32)

    # Dropout config resolved at trace time (static skip when inactive).
    p_drop = float(x6) if bool(x5) else 0.0
    apply_dropout = p_drop > 0.0

    bb = _default_block_b(B3) if block_b is None else int(block_b)
    assert B3 % bb == 0, "block_b must divide the kv batch"
    grid = (B3 // bb,)

    in_specs = [
        pl.BlockSpec((B2, DQ), lambda b: (0, 0)),
        pl.BlockSpec((bb, S, DK), lambda b: (b, 0, 0)),
        pl.BlockSpec((bb, S, DK), lambda b: (b, 0, 0)),
        pl.BlockSpec((DQ, DH), lambda b: (0, 0)),
        pl.BlockSpec((1, DH), lambda b: (0, 0)),
        pl.BlockSpec((DK, DH), lambda b: (0, 0)),
        pl.BlockSpec((1, DH), lambda b: (0, 0)),
        pl.BlockSpec((DK, DV), lambda b: (0, 0)),
        pl.BlockSpec((1, DV), lambda b: (0, 0)),
    ]
    inputs = [x2_c, x3_c, x4_c, wq_c, bq_f, wk_c, bk_f, wv_c, bv_f]

    if apply_dropout:
        keep_scale = 1.0 / (1.0 - p_drop) if p_drop < 1.0 else 0.0
        # Mask laid out (B2, B3*S) so it multiplies the batched score tile
        # directly; column block b covers kv-batches [b*bb, (b+1)*bb).
        u = jax.random.uniform(jax.random.PRNGKey(seed), (B2, B3 * S),
                               jnp.float32)
        drop_mask = jnp.where(u >= p_drop, keep_scale, 0.0).astype(compute_dtype)
        in_specs.append(pl.BlockSpec((B2, bb * S), lambda b: (0, b)))
        inputs.append(drop_mask)

    grid_spec = pltpu.PrefetchScalarGridSpec(
        num_scalar_prefetch=0,
        grid=grid,
        in_specs=in_specs,
        out_specs=pl.BlockSpec((bb, B2, DV), lambda b: (b, 0, 0)),
    )

    return pl.pallas_call(
        functools.partial(_mha_kernel, apply_dropout, bb, S),
        out_shape=jax.ShapeDtypeStruct((B3, B2, DV), jnp.float32),
        grid_spec=grid_spec,
        compiler_params=pltpu.CompilerParams(
            dimension_semantics=("parallel",)),
    )(*inputs)


def init_params(key, dq_in, dkv_in, dh, dv):
    """Deterministic torch.nn.Linear-style init (uniform +-1/sqrt(fan_in))."""
    def linear(k, fan_in, fan_out):
        k1, k2 = jax.random.split(k)
        bound = 1.0 / jnp.sqrt(fan_in)
        w_t = jax.random.uniform(k1, (fan_in, fan_out), jnp.float32, -bound, bound)
        b = jax.random.uniform(k2, (1, fan_out), jnp.float32, -bound, bound)
        return w_t, b

    kq, kk, kv = jax.random.split(key, 3)
    wq_t, bq = linear(kq, dq_in, dh)    # self.query
    wk_t, bk = linear(kk, dkv_in, dh)   # self.key
    wv_t, bv = linear(kv, dkv_in, dv)   # self.value
    return (wq_t, bq, wk_t, bk, wv_t, bv)


if __name__ == "__main__":
    # Small, mutually consistent, tile-aligned shapes implied by the forward
    # pass (original module dims are inconsistent; see TODO at top).
    B2, B3, S = 8, 4, 128
    DQ_IN, DKV_IN, DH, DV = 128, 128, 128, 128

    root = jax.random.PRNGKey(0)
    kx2, kx3, kx4, kp = jax.random.split(root, 4)

    x2 = jax.random.normal(kx2, (B2, DQ_IN), jnp.float32)
    x3 = jax.random.normal(kx3, (B3, S, DKV_IN), jnp.float32)
    x4 = jax.random.normal(kx4, (B3, S, DKV_IN), jnp.float32)
    x5 = True      # training
    x6 = 0.3       # dropout p
    x7 = None      # unused by forward
    x8 = 2         # scale divisor

    params = init_params(kp, DQ_IN, DKV_IN, DH, DV)

    out = mha_forward(x2, x3, x4, x5, x6, x7, x8, params, seed=0)
    out = jax.block_until_ready(out)

    assert out.shape == (B3, B2, DV), out.shape
    assert out.dtype == jnp.float32
    assert bool(jnp.all(jnp.isfinite(out)))
    print("KERNEL_OK")
</pallas_src>

<mosaic_0001>
module attributes {stable_mosaic.version = 11 : i64} {
  func.func @_mha_kernel(%arg0: i32, %arg1: memref<8x128xbf16, #tpu.memory_space<vmem>>, %arg2: memref<4x128x128xbf16, #tpu.memory_space<vmem>>, %arg3: memref<4x128x128xbf16, #tpu.memory_space<vmem>>, %arg4: memref<128x128xbf16, #tpu.memory_space<vmem>>, %arg5: memref<1x128xf32, #tpu.memory_space<vmem>>, %arg6: memref<128x128xbf16, #tpu.memory_space<vmem>>, %arg7: memref<1x128xf32, #tpu.memory_space<vmem>>, %arg8: memref<128x128xbf16, #tpu.memory_space<vmem>>, %arg9: memref<1x128xf32, #tpu.memory_space<vmem>>, %arg10: memref<8x512xbf16, #tpu.memory_space<vmem>>, %arg11: memref<4x8x128xf32, #tpu.memory_space<vmem>>) attributes {dimension_semantics = [#tpu.dimension_semantics<parallel>], iteration_bounds = array<i64: 1>, scalar_prefetch = 0 : i64, scratch_operands = 0 : i64, tpu.core_type = #tpu.core_type<tc>, window_params = [{pipeline_mode = #tpu.pipeline_mode<synchronous>, transform_indices = @transform_0, window_bounds = array<i64: 8, 128>}, {transform_indices = @transform_1, window_bounds = array<i64: 4, 128, 128>}, {transform_indices = @transform_2, window_bounds = array<i64: 4, 128, 128>}, {pipeline_mode = #tpu.pipeline_mode<synchronous>, transform_indices = @transform_3, window_bounds = array<i64: 128, 128>}, {pipeline_mode = #tpu.pipeline_mode<synchronous>, transform_indices = @transform_4, window_bounds = array<i64: 1, 128>}, {pipeline_mode = #tpu.pipeline_mode<synchronous>, transform_indices = @transform_5, window_bounds = array<i64: 128, 128>}, {pipeline_mode = #tpu.pipeline_mode<synchronous>, transform_indices = @transform_6, window_bounds = array<i64: 1, 128>}, {pipeline_mode = #tpu.pipeline_mode<synchronous>, transform_indices = @transform_7, window_bounds = array<i64: 128, 128>}, {pipeline_mode = #tpu.pipeline_mode<synchronous>, transform_indices = @transform_8, window_bounds = array<i64: 1, 128>}, {transform_indices = @transform_9, window_bounds = array<i64: 8, 512>}, {transform_indices = @transform_10, window_bounds = array<i64: 4, 8, 128>}]} {
    %c0 = arith.constant 0 : index
    %c0_0 = arith.constant 0 : index
    %0 = vector.load %arg1[%c0, %c0_0] : memref<8x128xbf16, #tpu.memory_space<vmem>>, vector<8x128xbf16>
    %c0_1 = arith.constant 0 : index
    %c0_2 = arith.constant 0 : index
    %1 = vector.load %arg4[%c0_1, %c0_2] : memref<128x128xbf16, #tpu.memory_space<vmem>>, vector<128x128xbf16>
    %cst = arith.constant dense<0.000000e+00> : vector<8x128xf32>
    %2 = tpu.matmul %0, %1, %cst {dimension_numbers = #tpu.dot_dimension_numbers<[1], [0], [0], [1], [0, 0, 1, 1], [], []>} : vector<8x128xbf16>, vector<128x128xbf16>, vector<8x128xf32> -> vector<8x128xf32>
    %c0_3 = arith.constant 0 : index
    %c0_4 = arith.constant 0 : index
    %3 = vector.load %arg5[%c0_3, %c0_4] : memref<1x128xf32, #tpu.memory_space<vmem>>, vector<1x128xf32>
    %4 = vector.broadcast %3 : vector<1x128xf32> to vector<8x128xf32>
    %5 = arith.addf %2, %4 : vector<8x128xf32>
    %c0_5 = arith.constant 0 : index
    %c0_6 = arith.constant 0 : index
    %c0_7 = arith.constant 0 : index
    %6 = vector.load %arg2[%c0_5, %c0_6, %c0_7] : memref<4x128x128xbf16, #tpu.memory_space<vmem>>, vector<4x128x128xbf16>
    %7 = vector.shape_cast %6 : vector<4x128x128xbf16> to vector<512x128xbf16>
    %c0_8 = arith.constant 0 : index
    %c0_9 = arith.constant 0 : index
    %c0_10 = arith.constant 0 : index
    %8 = vector.load %arg3[%c0_8, %c0_9, %c0_10] : memref<4x128x128xbf16, #tpu.memory_space<vmem>>, vector<4x128x128xbf16>
    %9 = vector.shape_cast %8 : vector<4x128x128xbf16> to vector<512x128xbf16>
    %c0_11 = arith.constant 0 : index
    %c0_12 = arith.constant 0 : index
    %10 = vector.load %arg6[%c0_11, %c0_12] : memref<128x128xbf16, #tpu.memory_space<vmem>>, vector<128x128xbf16>
    %cst_13 = arith.constant dense<0.000000e+00> : vector<512x128xf32>
    %11 = tpu.matmul %7, %10, %cst_13 {dimension_numbers = #tpu.dot_dimension_numbers<[1], [0], [0], [1], [0, 0, 1, 1], [], []>} : vector<512x128xbf16>, vector<128x128xbf16>, vector<512x128xf32> -> vector<512x128xf32>
    %c0_14 = arith.constant 0 : index
    %c0_15 = arith.constant 0 : index
    %12 = vector.load %arg7[%c0_14, %c0_15] : memref<1x128xf32, #tpu.memory_space<vmem>>, vector<1x128xf32>
    %13 = vector.broadcast %12 : vector<1x128xf32> to vector<512x128xf32>
    %14 = arith.addf %11, %13 : vector<512x128xf32>
    %c0_16 = arith.constant 0 : index
    %c0_17 = arith.constant 0 : index
    %15 = vector.load %arg8[%c0_16, %c0_17] : memref<128x128xbf16, #tpu.memory_space<vmem>>, vector<128x128xbf16>
    %cst_18 = arith.constant dense<0.000000e+00> : vector<512x128xf32>
    %16 = tpu.matmul %9, %15, %cst_18 {dimension_numbers = #tpu.dot_dimension_numbers<[1], [0], [0], [1], [0, 0, 1, 1], [], []>} : vector<512x128xbf16>, vector<128x128xbf16>, vector<512x128xf32> -> vector<512x128xf32>
    %c0_19 = arith.constant 0 : index
    %c0_20 = arith.constant 0 : index
    %17 = vector.load %arg9[%c0_19, %c0_20] : memref<1x128xf32, #tpu.memory_space<vmem>>, vector<1x128xf32>
    %18 = vector.broadcast %17 : vector<1x128xf32> to vector<512x128xf32>
    %19 = arith.addf %16, %18 : vector<512x128xf32>
    %cst_21 = arith.constant dense<0.000000e+00> : vector<8x512xf32>
    %20 = tpu.matmul %5, %14, %cst_21 {dimension_numbers = #tpu.dot_dimension_numbers<[1], [1], [0], [0], [0, 0, 1, 0], [], []>} : vector<8x128xf32>, vector<512x128xf32>, vector<8x512xf32> -> vector<8x512xf32>
    %cst_22 = arith.constant dense<0xFF800000> : vector<512xf32>
    %21 = vector.multi_reduction <maximumf>, %20, %cst_22 [0] : vector<8x512xf32> to vector<512xf32>
    %22 = vector.shape_cast %21 : vector<512xf32> to vector<1x512xf32>
    %23 = vector.broadcast %22 : vector<1x512xf32> to vector<8x512xf32>
    %24 = arith.subf %20, %23 : vector<8x512xf32>
    %25 = math.exp %24 : vector<8x512xf32>
    %cst_23 = arith.constant dense<0.000000e+00> : vector<512xf32>
    %26 = vector.multi_reduction <add>, %25, %cst_23 [0] : vector<8x512xf32> to vector<512xf32>
    %27 = vector.shape_cast %26 : vector<512xf32> to vector<1x512xf32>
    %28 = tpu.reciprocal %27 {approx = true} : vector<1x512xf32> -> vector<1x512xf32>
    %29 = vector.broadcast %28 : vector<1x512xf32> to vector<8x512xf32>
    %30 = arith.mulf %25, %29 : vector<8x512xf32>
    %c0_24 = arith.constant 0 : index
    %c0_25 = arith.constant 0 : index
    %31 = vector.load %arg10[%c0_24, %c0_25] : memref<8x512xbf16, #tpu.memory_space<vmem>>, vector<8x512xbf16>
    %32 = arith.extf %31 : vector<8x512xbf16> to vector<8x512xf32>
    %33 = arith.mulf %30, %32 : vector<8x512xf32>
    %34 = vector.extract_strided_slice %33 {offsets = [0, 0], sizes = [8, 128], strides = [1, 1]} : vector<8x512xf32> to vector<8x128xf32>
    %35 = vector.extract_strided_slice %19 {offsets = [0, 0], sizes = [128, 128], strides = [1, 1]} : vector<512x128xf32> to vector<128x128xf32>
    %cst_26 = arith.constant dense<0.000000e+00> : vector<8x128xf32>
    %36 = tpu.matmul %34, %35, %cst_26 {dimension_numbers = #tpu.dot_dimension_numbers<[1], [0], [0], [1], [0, 0, 1, 1], [], []>} : vector<8x128xf32>, vector<128x128xf32>, vector<8x128xf32> -> vector<8x128xf32>
    %c0_27 = arith.constant 0 : index
    %c0_28 = arith.constant 0 : index
    %c0_29 = arith.constant 0 : index
    %37 = vector.load %arg11[%c0_27, %c0_28, %c0_29] : memref<4x8x128xf32, #tpu.memory_space<vmem>>, vector<1x8x128xf32>
    %38 = vector.shape_cast %37 : vector<1x8x128xf32> to vector<8x128xf32>
    %39 = vector.shape_cast %36 : vector<8x128xf32> to vector<1x8x128xf32>
    tpu.vector_store %arg11[%c0_27, %c0_28, %c0_29], %39 {strides = array<i32>} : memref<4x8x128xf32, #tpu.memory_space<vmem>>, vector<1x8x128xf32>,
    %40 = vector.extract_strided_slice %33 {offsets = [0, 128], sizes = [8, 128], strides = [1, 1]} : vector<8x512xf32> to vector<8x128xf32>
    %41 = vector.extract_strided_slice %19 {offsets = [128, 0], sizes = [128, 128], strides = [1, 1]} : vector<512x128xf32> to vector<128x128xf32>
    %cst_30 = arith.constant dense<0.000000e+00> : vector<8x128xf32>
    %42 = tpu.matmul %40, %41, %cst_30 {dimension_numbers = #tpu.dot_dimension_numbers<[1], [0], [0], [1], [0, 0, 1, 1], [], []>} : vector<8x128xf32>, vector<128x128xf32>, vector<8x128xf32> -> vector<8x128xf32>
    %c1 = arith.constant 1 : index
    %c0_31 = arith.constant 0 : index
    %c0_32 = arith.constant 0 : index
    %43 = vector.load %arg11[%c1, %c0_31, %c0_32] : memref<4x8x128xf32, #tpu.memory_space<vmem>>, vector<1x8x128xf32>
    %44 = vector.shape_cast %43 : vector<1x8x128xf32> to vector<8x128xf32>
    %45 = vector.shape_cast %42 : vector<8x128xf32> to vector<1x8x128xf32>
    tpu.vector_store %arg11[%c1, %c0_31, %c0_32], %45 {strides = array<i32>} : memref<4x8x128xf32, #tpu.memory_space<vmem>>, vector<1x8x128xf32>,
    %46 = vector.extract_strided_slice %33 {offsets = [0, 256], sizes = [8, 128], strides = [1, 1]} : vector<8x512xf32> to vector<8x128xf32>
    %47 = vector.extract_strided_slice %19 {offsets = [256, 0], sizes = [128, 128], strides = [1, 1]} : vector<512x128xf32> to vector<128x128xf32>
    %cst_33 = arith.constant dense<0.000000e+00> : vector<8x128xf32>
    %48 = tpu.matmul %46, %47, %cst_33 {dimension_numbers = #tpu.dot_dimension_numbers<[1], [0], [0], [1], [0, 0, 1, 1], [], []>} : vector<8x128xf32>, vector<128x128xf32>, vector<8x128xf32> -> vector<8x128xf32>
    %c2 = arith.constant 2 : index
    %c0_34 = arith.constant 0 : index
    %c0_35 = arith.constant 0 : index
    %49 = vector.load %arg11[%c2, %c0_34, %c0_35] : memref<4x8x128xf32, #tpu.memory_space<vmem>>, vector<1x8x128xf32>
    %50 = vector.shape_cast %49 : vector<1x8x128xf32> to vector<8x128xf32>
    %51 = vector.shape_cast %48 : vector<8x128xf32> to vector<1x8x128xf32>
    tpu.vector_store %arg11[%c2, %c0_34, %c0_35], %51 {strides = array<i32>} : memref<4x8x128xf32, #tpu.memory_space<vmem>>, vector<1x8x128xf32>,
    %52 = vector.extract_strided_slice %33 {offsets = [0, 384], sizes = [8, 128], strides = [1, 1]} : vector<8x512xf32> to vector<8x128xf32>
    %53 = vector.extract_strided_slice %19 {offsets = [384, 0], sizes = [128, 128], strides = [1, 1]} : vector<512x128xf32> to vector<128x128xf32>
    %cst_36 = arith.constant dense<0.000000e+00> : vector<8x128xf32>
    %54 = tpu.matmul %52, %53, %cst_36 {dimension_numbers = #tpu.dot_dimension_numbers<[1], [0], [0], [1], [0, 0, 1, 1], [], []>} : vector<8x128xf32>, vector<128x128xf32>, vector<8x128xf32> -> vector<8x128xf32>
    %c3 = arith.constant 3 : index
    %c0_37 = arith.constant 0 : index
    %c0_38 = arith.constant 0 : index
    %55 = vector.load %arg11[%c3, %c0_37, %c0_38] : memref<4x8x128xf32, #tpu.memory_space<vmem>>, vector<1x8x128xf32>
    %56 = vector.shape_cast %55 : vector<1x8x128xf32> to vector<8x128xf32>
    %57 = vector.shape_cast %54 : vector<8x128xf32> to vector<1x8x128xf32>
    tpu.vector_store %arg11[%c3, %c0_37, %c0_38], %57 {strides = array<i32>} : memref<4x8x128xf32, #tpu.memory_space<vmem>>, vector<1x8x128xf32>,
    return
  }
  func.func @transform_0(%arg0: i32) -> (i32, i32) {
    %c0_i32 = arith.constant 0 : i32
    %c0_i32_0 = arith.constant 0 : i32
    %c0_i32_1 = arith.constant 0 : i32
    return %c0_i32, %c0_i32_0 : i32, i32
  }
  func.func @transform_1(%arg0: i32) -> (i32, i32, i32) {
    %c0_i32 = arith.constant 0 : i32
    %c0_i32_0 = arith.constant 0 : i32
    %c0_i32_1 = arith.constant 0 : i32
    return %arg0, %c0_i32, %c0_i32_0 : i32, i32, i32
  }
  func.func @transform_2(%arg0: i32) -> (i32, i32, i32) {
    %c0_i32 = arith.constant 0 : i32
    %c0_i32_0 = arith.constant 0 : i32
    %c0_i32_1 = arith.constant 0 : i32
    return %arg0, %c0_i32, %c0_i32_0 : i32, i32, i32
  }
  func.func @transform_3(%arg0: i32) -> (i32, i32) {
    %c0_i32 = arith.constant 0 : i32
    %c0_i32_0 = arith.constant 0 : i32
    %c0_i32_1 = arith.constant 0 : i32
    return %c0_i32, %c0_i32_0 : i32, i32
  }
  func.func @transform_4(%arg0: i32) -> (i32, i32) {
    %c0_i32 = arith.constant 0 : i32
    %c0_i32_0 = arith.constant 0 : i32
    %c0_i32_1 = arith.constant 0 : i32
    return %c0_i32, %c0_i32_0 : i32, i32
  }
  func.func @transform_5(%arg0: i32) -> (i32, i32) {
    %c0_i32 = arith.constant 0 : i32
    %c0_i32_0 = arith.constant 0 : i32
    %c0_i32_1 = arith.constant 0 : i32
    return %c0_i32, %c0_i32_0 : i32, i32
  }
  func.func @transform_6(%arg0: i32) -> (i32, i32) {
    %c0_i32 = arith.constant 0 : i32
    %c0_i32_0 = arith.constant 0 : i32
    %c0_i32_1 = arith.constant 0 : i32
    return %c0_i32, %c0_i32_0 : i32, i32
  }
  func.func @transform_7(%arg0: i32) -> (i32, i32) {
    %c0_i32 = arith.constant 0 : i32
    %c0_i32_0 = arith.constant 0 : i32
    %c0_i32_1 = arith.constant 0 : i32
    return %c0_i32, %c0_i32_0 : i32, i32
  }
  func.func @transform_8(%arg0: i32) -> (i32, i32) {
    %c0_i32 = arith.constant 0 : i32
    %c0_i32_0 = arith.constant 0 : i32
    %c0_i32_1 = arith.constant 0 : i32
    return %c0_i32, %c0_i32_0 : i32, i32
  }
  func.func @transform_9(%arg0: i32) -> (i32, i32) {
    %c0_i32 = arith.constant 0 : i32
    %c0_i32_0 = arith.constant 0 : i32
    return %c0_i32, %arg0 : i32, i32
  }
  func.func @transform_10(%arg0: i32) -> (i32, i32, i32) {
    %c0_i32 = arith.constant 0 : i32
    %c0_i32_0 = arith.constant 0 : i32
    %c0_i32_1 = arith.constant 0 : i32
    return %arg0, %c0_i32, %c0_i32_0 : i32, i32, i32
  }
}

</mosaic_0001>

<bundles_post_ra>
// kernel: tpu_custom_call.1
= control target key start
LH: loop header
LB: loop body
LE: loop exit
PB: predicated region body
PF: predicated region fallthrough
CT: control target
= control target key end

     0   :  { %15 = vsyncpa [#allocation3], 0  ;;  %s3716_s0 = inlined_call_operand.hbm [shape: bf16[8,128], index: 0, kind: input, shape index: {}]   ;;  %s3717_s1 = inlined_call_operand.hbm [shape: bf16[4,128,128], index: 1, kind: input, shape index: {}]   ;;  %s3718_s2 = inlined_call_operand.hbm [shape: bf16[4,128,128], index: 2, kind: input, shape index: {}]   ;;  %s3719_s3 = inlined_call_operand.hbm [shape: bf16[128,128], index: 3, kind: input, shape index: {}]   ;;  %s3720_s4 = inlined_call_operand.vmem [shape: f32[1,128], index: 4, kind: input, shape index: {}]   ;;  %s3721_s5 = inlined_call_operand.hbm [shape: bf16[128,128], index: 5, kind: input, shape index: {}]   ;;  %s3722_s6 = inlined_call_operand.vmem [shape: f32[1,128], index: 6, kind: input, shape index: {}]   ;;  %s3723_s7 = inlined_call_operand.hbm [shape: bf16[128,128], index: 7, kind: input, shape index: {}]   ;;  %s3724_s8 = inlined_call_operand.vmem [shape: f32[1,128], index: 8, kind: input, shape index: {}]   ;;  %s3725_s9 = inlined_call_operand.vmem [shape: bf16[8,512], index: 9, kind: input, shape index: {}]   ;;  %s3726_s10 = inlined_call_operand.hbm [shape: f32[4,8,128], index: 10, kind: output, shape index: {}]  }
   0x1   :  { %16 = vsyncpa [#allocation6], 0 }
   0x2   :  { %17 = vsyncpa [#allocation9], 0 }
   0x3   :  { %18 = vsyncpa [#allocation12], 0 }
   0x4   :  { %19 = vsyncpa [#allocation4], 0  ;;  %s3066_s13 = smov [#allocation5]   ;;  %s2902_s17 = scalar_lea.hbm %s3717_s1, 4096 }
   0x5   :  { %s35_s14 = sshll.u32 %s3066_s13, 4  ;;  %p2903_p0 = scmp.ne.s32.totalorder %s3717_s1, %s2902_s17  ;;  %s36_s14 = int_to_ptr.vmem [resolvable:$true] %s35_s14 }
   0x6   :  { %p2906_p1 = scmp.lt.u32.totalorder %s2902_s17, %s3717_s1 }
   0x8   :  { %p2908_p2 = pnand %p2906_p1, %p2903_p0 }
   0xa   :  { %2911 = shalt.err (!%p2908_p2)
}
   0xb   :  { %s2912_s22 = scalar_lea.vmem %s36_s14, 4096  ;;  %p2917_p4 = scmp.lt.s32.totalorder %s36_s14, %s36_s14 }
   0xc   :  { %p2913_p3 = scmp.ne.s32.totalorder %s36_s14, %s2912_s22  ;;  %p2918_p5 = scmp.lt.s32.totalorder %s2912_s22, %s2912_s22 }
   0xe   :  { %p2919_p6 = por %p2918_p5, %p2917_p4 }
  0x10   :  { %p2920_p7 = pnand %p2919_p6, %p2913_p3 }
  0x12   :  { %2923 = shalt.err (!%p2920_p7)
}
  0x13   :  { %s3067_s23 = smov 64   ;;  %s3068_s24 = smov 4  }
  0x14   :  { %41 = dma.hbm_to_vmem [thread:$0]  %s3717_s1, 4096, %s36_s14, [#allocation6], %s3067_s23, %s3067_s23, %s3068_s24  }
  0x15   :  { %s3069_s27 = smov [#allocation8]   ;;  %s3070_s29 = smov [#allocation2]  }
  0x16   :  { %s59_s28 = sshll.u32 %s3069_s27, 4  ;;  %s26_s30 = sshll.u32 %s3070_s29, 4  ;;  %s60_s28 = int_to_ptr.vmem [resolvable:$true] %s59_s28  ;;  %s27_s30 = int_to_ptr.vmem [resolvable:$true] %s26_s30 }
  0x17   :  { %s2924_s13 = scalar_lea.hbm %s3719_s3, 1024 }
  0x18   :  { %p2925_p8 = scmp.ne.s32.totalorder %s3719_s3, %s2924_s13  ;;  %p2928_p9 = scmp.lt.u32.totalorder %s2924_s13, %s3719_s3 }
  0x1a   :  { %p2930_p10 = pnand %p2928_p9, %p2925_p8 }
  0x1c   :  { %2933 = shalt.err (!%p2930_p10)
}
  0x1d   :  { %s2934_s1 = scalar_lea.vmem %s60_s28, 1024  ;;  %p2939_p12 = scmp.lt.s32.totalorder %s60_s28, %s60_s28 }
  0x1e   :  { %p2935_p11 = scmp.ne.s32.totalorder %s60_s28, %s2934_s1  ;;  %p2940_p13 = scmp.lt.s32.totalorder %s2934_s1, %s2934_s1 }
  0x20   :  { %p2941_p0 = por %p2940_p13, %p2939_p12 }
  0x22   :  { %p2942_p1 = pnand %p2941_p0, %p2935_p11 }
  0x24   :  { %2945 = shalt.err (!%p2942_p1)
}
  0x25   :  { %65 = dma.hbm_to_vmem [thread:$0]  %s3719_s3, 1024, %s60_s28, [#allocation9], %s3067_s23, %s3067_s23, %s3068_s24  }
  0x26   :  { %s2946_s22 = scalar_lea.hbm %s3716_s0, 64 }
  0x27   :  { %p2947_p2 = scmp.ne.s32.totalorder %s3716_s0, %s2946_s22  ;;  %p2950_p3 = scmp.lt.u32.totalorder %s2946_s22, %s3716_s0 }
  0x29   :  { %p2952_p4 = pnand %p2950_p3, %p2947_p2 }
  0x2b   :  { %2955 = shalt.err (!%p2952_p4)
}
  0x2c   :  { %s2956_s11 = scalar_lea.vmem %s27_s30, 64  ;;  %p2961_p6 = scmp.lt.s32.totalorder %s27_s30, %s27_s30 }
  0x2d   :  { %p2957_p5 = scmp.ne.s32.totalorder %s27_s30, %s2956_s11  ;;  %p2962_p7 = scmp.lt.s32.totalorder %s2956_s11, %s2956_s11 }
  0x2f   :  { %p2963_p8 = por %p2962_p7, %p2961_p6 }
  0x31   :  { %p2964_p9 = pnand %p2963_p8, %p2957_p5 }
  0x33   :  { %2967 = shalt.err (!%p2964_p9)
}
  0x34   :  { %29 = dma.hbm_to_vmem [thread:$0]  %s3716_s0, 64, %s27_s30, [#allocation3]  }
  0x35   :  { %s3071_s12 = smov [#allocation7]   ;;  %s3072_s15 = smov [#allocation10]  }
  0x36   :  { %s47_s13 = sshll.u32 %s3071_s12, 4  ;;  %s73_s16 = sshll.u32 %s3072_s15, 4  ;;  %s48_s13 = int_to_ptr.vmem [resolvable:$true] %s47_s13  ;;  %s74_s16 = int_to_ptr.vmem [resolvable:$true] %s73_s16 }
  0x37   :  { %s2968_s1 = scalar_lea.hbm %s3718_s2, 4096 }
  0x38   :  { %p2969_p10 = scmp.ne.s32.totalorder %s3718_s2, %s2968_s1  ;;  %p2972_p11 = scmp.lt.u32.totalorder %s2968_s1, %s3718_s2 }
  0x3a   :  { %p2974_p12 = pnand %p2972_p11, %p2969_p10 }
  0x3c   :  { %2977 = shalt.err (!%p2974_p12)
}
  0x3d   :  { %s2978_s0 = scalar_lea.vmem %s48_s13, 4096  ;;  %p2983_p0 = scmp.lt.s32.totalorder %s48_s13, %s48_s13 }
  0x3e   :  { %p2979_p13 = scmp.ne.s32.totalorder %s48_s13, %s2978_s0  ;;  %p2984_p1 = scmp.lt.s32.totalorder %s2978_s0, %s2978_s0 }
  0x40   :  { %p2985_p2 = por %p2984_p1, %p2983_p0 }
  0x42   :  { %p2986_p3 = pnand %p2985_p2, %p2979_p13 }
  0x44   :  { %2989 = shalt.err (!%p2986_p3)
}
  0x45   :  { %53 = dma.hbm_to_vmem [thread:$0]  %s3718_s2, 4096, %s48_s13, [#allocation6], %s3067_s23, %s3067_s23, %s3068_s24  }
  0x46   :  { %s2990_s27 = scalar_lea.hbm %s3721_s5, 1024 }
  0x47   :  { %p2991_p4 = scmp.ne.s32.totalorder %s3721_s5, %s2990_s27  ;;  %p2994_p5 = scmp.lt.u32.totalorder %s2990_s27, %s3721_s5 }
  0x49   :  { %p2996_p6 = pnand %p2994_p5, %p2991_p4 }
  0x4b   :  { %2999 = shalt.err (!%p2996_p6)
}
  0x4c   :  { %s3000_s12 = scalar_lea.vmem %s74_s16, 1024  ;;  %p3005_p8 = scmp.lt.s32.totalorder %s74_s16, %s74_s16 }
  0x4d   :  { %p3001_p7 = scmp.ne.s32.totalorder %s74_s16, %s3000_s12  ;;  %p3006_p9 = scmp.lt.s32.totalorder %s3000_s12, %s3000_s12 }
  0x4f   :  { %p3007_p10 = por %p3006_p9, %p3005_p8 }
  0x51   :  { %p3008_p11 = pnand %p3007_p10, %p3001_p7 }
  0x53   :  { %3011 = shalt.err (!%p3008_p11)
}
  0x54   :  { %79 = dma.hbm_to_vmem [thread:$0]  %s3721_s5, 1024, %s74_s16, [#allocation9], %s3067_s23, %s3067_s23, %s3068_s24  }
  0x55   :  { %s3073_s15 = smov [#allocation11]   ;;  %s3012_s14 = scalar_lea.hbm %s3723_s7, 1024 }
  0x56   :  { %s87_s17 = sshll.u32 %s3073_s15, 4  ;;  %p3013_p12 = scmp.ne.s32.totalorder %s3723_s7, %s3012_s14  ;;  %s88_s17 = int_to_ptr.vmem [resolvable:$true] %s87_s17 }
  0x57   :  { %p3016_p13 = scmp.lt.u32.totalorder %s3012_s14, %s3723_s7 }
  0x59   :  { %p3018_p0 = pnand %p3016_p13, %p3013_p12 }
  0x5b   :  { %3021 = shalt.err (!%p3018_p0)
}
  0x5c   :  { %s3022_s30 = scalar_lea.vmem %s88_s17, 1024  ;;  %p3027_p2 = scmp.lt.s32.totalorder %s88_s17, %s88_s17 }
  0x5d   :  { %p3023_p1 = scmp.ne.s32.totalorder %s88_s17, %s3022_s30  ;;  %p3028_p3 = scmp.lt.s32.totalorder %s3022_s30, %s3022_s30 }
  0x5f   :  { %p3029_p4 = por %p3028_p3, %p3027_p2 }
  0x61   :  { %p3030_p5 = pnand %p3029_p4, %p3023_p1 }
  0x63   :  { %3033 = shalt.err (!%p3030_p5)
}
  0x64   :  { %93 = dma.hbm_to_vmem [thread:$0]  %s3723_s7, 1024, %s88_s17, [#allocation12], %s3067_s23, %s3067_s23, %s3068_s24  }
  0x65   :  { %3056 = dma.done.wait [#allocation3], 64  }
  0x66   :  { %3057 = vsyncadd [#allocation3], 4294967232 }
  0x67   :  { %3058 = dma.done.wait [#allocation6], 8192  }
  0x68   :  { %3059 = vsyncadd [#allocation6], 4294959104 }
  0x69   :  { %3060 = dma.done.wait [#allocation9], 2048  }
  0x6a   :  { %3061 = vsyncadd [#allocation9], 4294965248 }
  0x6b   :  { %3062 = dma.done.wait [#allocation12], 1024  }
  0x6c   :  { %3063 = vsyncadd [#allocation12], 4294966272  ;;  %v3074_v0 = vmov 0.0   ;;  %v2798_v1 = vld [vmem:[#allocation10] sm:$0xff]   ;;  %v2799_v2 = vld [vmem:[#allocation10 + $0x8] sm:$0xff]   ;;  %vm3075_vm0 = vmmov 0  }
  0x6d   :  { %2304 = vmatprep.subr.bf16.mxu0 %v3074_v0  ;;  %2324 = vmatprep.subr.bf16.mxu1 %v2798_v1  ;;  %v2800_v3 = vld [vmem:[#allocation10 + $0x10] sm:$0xff]   ;;  %v2801_v4 = vld [vmem:[#allocation10 + $0x18] sm:$0xff]   ;;  %v2806_v5 = vld [vmem:[#allocation5] sm:$0xff]   ;;  %s3077_s29 = smov [#allocation13]  }
  0x6e   :  { %2325 = vmatpush3.bf16.msra.mxu1 %v2798_v1  ;;  %2320 = vmatprep.mubr.msk.bf16.mxu0 %vm3075_vm0, %v3074_v0  ;;  %v2802_v6 = vld [vmem:[#allocation10 + $0x20] sm:$0xff]   ;;  %v2803_v7 = vld [vmem:[#allocation10 + $0x28] sm:$0xff]   ;;  %v2804_v8 = vld [vmem:[#allocation10 + $0x30] sm:$0xff]   ;;  %s1973_s11 = sshll.u32 %s3077_s29, 4  ;;  %s1974_s11 = int_to_ptr.vmem [resolvable:$true] %s1973_s11 }
  0x6f   :  { %2326 = vmatprep.subr.bf16.mxu1 %v2799_v2  ;;  %2340 = vmatprep.mubr.bf16.mxu1 %v2806_v5  ;;  %v2805_v9 = vld [vmem:[#allocation10 + $0x38] sm:$0xff]   ;;  %v2807_v10 = vld [vmem:[#allocation5 + $0x8] sm:$0xff]   ;;  %v2827_v11 = vld [vmem:[#allocation8] sm:$0xff]   ;;  %p3039_p7 = scmp.lt.s32.totalorder %s1974_s11, %s1974_s11 }
  0x70   :  { %v2808_v12 = vld [vmem:[#allocation5 + $0x10] sm:$0xff]   ;;  %2305 = vmatpush3.bf16.msra.mxu0 %v2827_v11  ;;  %v2829_v13 = vld [vmem:[#allocation8 + $0x8] sm:$0xff]   ;;  %v2809_v15 = vld [vmem:[#allocation5 + $0x18] sm:$0xff]  }
  0x71   :  { %2306 = vmatprep.subr.bf16.mxu0 %v3074_v0  ;;  %v2831_v14 = vld [vmem:[#allocation8 + $0x10] sm:$0xff]   ;;  %v2810_v16 = vld [vmem:[#allocation5 + $0x20] sm:$0xff]   ;;  %v2833_v17 = vld [vmem:[#allocation8 + $0x18] sm:$0xff]  }
  0x72   :  { %2327 = vmatpush3.bf16.msra.mxu1 %v2799_v2  ;;  %v2835_v18 = vld [vmem:[#allocation8 + $0x20] sm:$0xff]   ;;  %v2811_v19 = vld [vmem:[#allocation5 + $0x28] sm:$0xff]   ;;  %v2812_v20 = vld [vmem:[#allocation5 + $0x30] sm:$0xff]  }
  0x73   :  { %2328 = vmatprep.subr.bf16.mxu1 %v2800_v3  ;;  %v2837_v21 = vld [vmem:[#allocation8 + $0x28] sm:$0xff]   ;;  %v2838_v22 = vld [vmem:[#allocation8 + $0x30] sm:$0xff]   ;;  %v2813_v23 = vld [vmem:[#allocation5 + $0x38] sm:$0xff]  }
  0x74   :  { %2307 = vmatpush3.bf16.msra.mxu0 %v2829_v13  ;;  %v2814_v24 = vld [vmem:[#allocation5 + $0x40] sm:$0xff]   ;;  %v2839_v25 = vld [vmem:[#allocation8 + $0x38] sm:$0xff]   ;;  %v2815_v27 = vld [vmem:[#allocation5 + $0x48] sm:$0xff]  }
  0x75   :  { %2308 = vmatprep.subr.bf16.mxu0 %v3074_v0  ;;  %v117_v26 = vld [vmem:[#allocation2] sm:$0xf]  ;;  %v2816_v28 = vld [vmem:[#allocation5 + $0x50] sm:$0xff]   ;;  %v2818_v30 = vld [vmem:[#allocation5 + $0x60] sm:$0xff]  }
  0x76   :  { %2329 = vmatpush3.bf16.msra.mxu1 %v2800_v3  ;;  %v2817_v29 = vld [vmem:[#allocation5 + $0x58] sm:$0xff]   ;;  %v2819_v31 = vld [vmem:[#allocation5 + $0x68] sm:$0xff]   ;;  %v2820_v32 = vld [vmem:[#allocation5 + $0x70] sm:$0xff]  }
  0x77   :  { %2330 = vmatprep.subr.bf16.mxu1 %v2801_v4  ;;  %v2821_v33 = vld [vmem:[#allocation5 + $0x78] sm:$0xff]   ;;  %v2822_v34 = vld [vmem:[#allocation5 + $0x80] sm:$0xff]   ;;  %v2823_v35 = vld [vmem:[#allocation5 + $0x88] sm:$0xff]  }
  0x78   :  { %2309 = vmatpush3.bf16.msra.mxu0 %v2831_v14  ;;  %v2824_v36 = vld [vmem:[#allocation5 + $0x90] sm:$0xff]   ;;  %v2846_v37 = vld [vmem:[#allocation11] sm:$0xff]   ;;  %v2825_v38 = vld [vmem:[#allocation5 + $0x98] sm:$0xff]  }
  0x79   :  { %2310 = vmatprep.subr.bf16.mxu0 %v3074_v0  ;;  %v2847_v39 = vld [vmem:[#allocation11 + $0x8] sm:$0xff]   ;;  %v2826_v40 = vld [vmem:[#allocation5 + $0xa0] sm:$0xff]   ;;  %v2848_v41 = vld [vmem:[#allocation11 + $0x10] sm:$0xff]  }
  0x7a   :  { %2331 = vmatpush3.bf16.msra.mxu1 %v2801_v4  ;;  %v2828_v42 = vld [vmem:[#allocation5 + $0xa8] sm:$0xff]   ;;  %v2849_v43 = vld [vmem:[#allocation11 + $0x18] sm:$0xff]   ;;  %v2830_v44 = vld [vmem:[#allocation5 + $0xb0] sm:$0xff]  }
  0x7b   :  { %2332 = vmatprep.subr.bf16.mxu1 %v2802_v6  ;;  %v2850_v45 = vld [vmem:[#allocation11 + $0x20] sm:$0xff]   ;;  %v2832_v46 = vld [vmem:[#allocation5 + $0xb8] sm:$0xff]   ;;  %v2851_v47 = vld [vmem:[#allocation11 + $0x28] sm:$0xff]  }
  0x7c   :  { %2311 = vmatpush3.bf16.msra.mxu0 %v2833_v17  ;;  %v2834_v48 = vld [vmem:[#allocation5 + $0xc0] sm:$0xff]   ;;  %v2852_v49 = vld [vmem:[#allocation11 + $0x30] sm:$0xff]   ;;  %v2836_v50 = vld [vmem:[#allocation5 + $0xc8] sm:$0xff]  }
  0x7d   :  { %2312 = vmatprep.subr.bf16.mxu0 %v3074_v0  ;;  %v2853_v51 = vld [vmem:[#allocation11 + $0x38] sm:$0xff]   ;;  %v2840_v52 = vld [vmem:[#allocation5 + $0xd0] sm:$0xff]   ;;  %v2854_v53 = vld [vmem:[#allocation7] sm:$0xff]  }
  0x7e   :  { %2333 = vmatpush3.bf16.msra.mxu1 %v2802_v6  ;;  %v2855_v54 = vld [vmem:[#allocation7 + $0x8] sm:$0xff]   ;;  %v2841_v55 = vld [vmem:[#allocation5 + $0xd8] sm:$0xff]   ;;  %v2842_v56 = vld [vmem:[#allocation5 + $0xe0] sm:$0xff]  }
  0x7f   :  { %2334 = vmatprep.subr.bf16.mxu1 %v2803_v7  ;;  %v2856_v57 = vld [vmem:[#allocation7 + $0x10] sm:$0xff]   ;;  %v2857_v58 = vld [vmem:[#allocation7 + $0x18] sm:$0xff]   ;;  %v2843_v59 = vld [vmem:[#allocation5 + $0xe8] sm:$0xff]  }
  0x80   :  { %2313 = vmatpush3.bf16.msra.mxu0 %v2835_v18  ;;  %v2844_v60 = vld [vmem:[#allocation5 + $0xf0] sm:$0xff]   ;;  %v2858_v61 = vld [vmem:[#allocation7 + $0x20] sm:$0xff]   ;;  %v2859_v62 = vld [vmem:[#allocation7 + $0x28] sm:$0xff]  }
  0x81   :  { %2314 = vmatprep.subr.bf16.mxu0 %v3074_v0  ;;  %v2845_v63 = vld [vmem:[#allocation5 + $0xf8] sm:$0xff]   ;;  %v2860_v1 = vld [vmem:[#allocation7 + $0x30] sm:$0xff]   ;;  %v2862_v3 = vld [vmem:[#allocation7 + $0x40] sm:$0xff]  }
  0x82   :  { %2335 = vmatpush3.bf16.msra.mxu1 %v2803_v7  ;;  %v2861_v2 = vld [vmem:[#allocation7 + $0x38] sm:$0xff]   ;;  %v2863_v4 = vld [vmem:[#allocation7 + $0x48] sm:$0xff]   ;;  %v2864_v5 = vld [vmem:[#allocation7 + $0x50] sm:$0xff]  }
  0x83   :  { %2336 = vmatprep.subr.bf16.mxu1 %v2804_v8  ;;  %v2865_v6 = vld [vmem:[#allocation7 + $0x58] sm:$0xff]   ;;  %v2866_v7 = vld [vmem:[#allocation7 + $0x60] sm:$0xff]   ;;  %v2872_v13 = vld [vmem:[#allocation7 + $0x90] sm:$0xff]  }
  0x84   :  { %2315 = vmatpush3.bf16.msra.mxu0 %v2837_v21  ;;  %v2870_v11 = vld [vmem:[#allocation7 + $0x80] sm:$0xff]   ;;  %v2873_v14 = vld [vmem:[#allocation7 + $0x98] sm:$0xff]   ;;  %v2876_v17 = vld [vmem:[#allocation7 + $0xb0] sm:$0xff]  }
  0x85   :  { %2316 = vmatprep.subr.bf16.mxu0 %v3074_v0  ;;  %v2877_v18 = vld [vmem:[#allocation7 + $0xb8] sm:$0xff]   ;;  %v2880_v21 = vld [vmem:[#allocation7 + $0xd0] sm:$0xff]  }
  0x86   :  { %2337 = vmatpush3.bf16.msra.mxu1 %v2804_v8  ;;  %v2867_v8 = vld [vmem:[#allocation7 + $0x68] sm:$0xff]  }
  0x87   :  { %2338 = vmatprep.subr.bf16.mxu1 %v2805_v9 }
  0x88   :  { %2317 = vmatpush3.bf16.msra.mxu0 %v2838_v22  ;;  %v2881_v22 = vld [vmem:[#allocation7 + $0xd8] sm:$0xff]  }
  0x89   :  { %2318 = vmatprep.subr.bf16.mxu0 %v3074_v0 }
  0x8a   :  { %2339 = vmatpush3.bf16.msra.mxu1 %v2805_v9  ;;  %v2868_v9 = vld [vmem:[#allocation7 + $0x70] sm:$0xff]  }
  0x8c   :  { %2319 = vmatpush3.bf16.msra.mxu0 %v2839_v25 }
  0x8d   :  { %2341 = vmatmul.mubr.bf16.vlgmr.msra.gmra.mrb[0].mxu1 %v2807_v10  ;;  %2404 = vmatprep.subr.bf16.mxu0 %v2846_v37  ;;  %v2869_v10 = vld [vmem:[#allocation7 + $0x78] sm:$0xff]  }
  0x8e   :  { %2344 = vmatprep.mubr.bf16.mxu1 %v2808_v12  ;;  %v2871_v12 = vld [vmem:[#allocation7 + $0x88] sm:$0xff]  }
  0x8f   :  { %2321 = vmatmul.mubr.bf16.vlgmr.msra.gmra.mrb[0].mxu0 %v117_v26  ;;  %v3235_v26 = vld [vmem:[%s3722_s6] ss:$0 sm:$0xff] }
  0x90   :  { %2405 = vmatpush3.bf16.msra.mxu0 %v2846_v37  ;;  %2420 = vmatprep.mubr.bf16.mxu0 %v2854_v53 }
  0x91   :  { %2406 = vmatprep.subr.bf16.mxu0 %v2847_v39 }
  0x94   :  { %2407 = vmatpush3.bf16.msra.mxu0 %v2847_v39 }
  0x95   :  { %2345 = vmatmul.mubr.bf16.gmra.mrb[4].mxu1 %v2809_v15  ;;  %2408 = vmatprep.subr.bf16.mxu0 %v2848_v41  ;;  %v2874_v15 = vld [vmem:[#allocation7 + $0xa0] sm:$0xff]  }
  0x96   :  { %2348 = vmatprep.mubr.bf16.mxu1 %v2810_v16  ;;  %v2875_v16 = vld [vmem:[#allocation7 + $0xa8] sm:$0xff]  }
  0x98   :  { %2409 = vmatpush3.bf16.msra.mxu0 %v2848_v41 }
  0x99   :  { %2410 = vmatprep.subr.bf16.mxu0 %v2849_v43 }
  0x9c   :  { %2411 = vmatpush3.bf16.msra.mxu0 %v2849_v43 }
  0x9d   :  { %2349 = vmatmul.mubr.bf16.gmra.mrb[8].mxu1 %v2811_v19  ;;  %2412 = vmatprep.subr.bf16.mxu0 %v2850_v45  ;;  %v2878_v19 = vld [vmem:[#allocation7 + $0xc0] sm:$0xff]  }
  0x9e   :  { %2352 = vmatprep.mubr.bf16.mxu1 %v2812_v20  ;;  %v2879_v20 = vld [vmem:[#allocation7 + $0xc8] sm:$0xff]  }
  0xa0   :  { %2413 = vmatpush3.bf16.msra.mxu0 %v2850_v45 }
  0xa1   :  { %2414 = vmatprep.subr.bf16.mxu0 %v2851_v47 }
  0xa4   :  { %2415 = vmatpush3.bf16.msra.mxu0 %v2851_v47 }
  0xa5   :  { %2353 = vmatmul.mubr.bf16.gmra.mrb[12].mxu1 %v2813_v23  ;;  %2416 = vmatprep.subr.bf16.mxu0 %v2852_v49  ;;  %v2882_v23 = vld [vmem:[#allocation7 + $0xe0] sm:$0xff]  }
  0xa6   :  { %2356 = vmatprep.mubr.bf16.mxu1 %v2814_v24  ;;  %v2883_v24 = vld [vmem:[#allocation7 + $0xe8] sm:$0xff]  }
  0xa8   :  { %2417 = vmatpush3.bf16.msra.mxu0 %v2852_v49 }
  0xa9   :  { %2418 = vmatprep.subr.bf16.mxu0 %v2853_v51 }
  0xac   :  { %2419 = vmatpush3.bf16.msra.mxu0 %v2853_v51 }
  0xad   :  { %2357 = vmatmul.mubr.bf16.gmra.mrb[16].mxu1 %v2815_v27 }
  0xae   :  { %2360 = vmatprep.mubr.bf16.mxu1 %v2816_v28 }
  0xaf   :  { %2421 = vmatmul.mubr.bf16.vlgmr.msra.gmra.mrb[4].mxu0 %v2855_v54 }
  0xb0   :  { %2424 = vmatprep.mubr.bf16.mxu0 %v2856_v57 }
  0xb5   :  { %2361 = vmatmul.mubr.bf16.gmra.mrb[20].mxu1 %v2817_v29 }
  0xb6   :  { %2364 = vmatprep.mubr.bf16.mxu1 %v2818_v30 }
  0xb7   :  { %2425 = vmatmul.mubr.bf16.gmra.mrb[8].mxu0 %v2857_v58 }
  0xb8   :  { %2428 = vmatprep.mubr.bf16.mxu0 %v2858_v61  ;;  %v1988_v61 = vld [vmem:[%s3720_s4] ss:$0 sm:$0xff] }
  0xbd   :  { %2365 = vmatmul.mubr.bf16.gmra.mrb[24].mxu1 %v2819_v31 }
  0xbe   :  { %2368 = vmatprep.mubr.bf16.mxu1 %v2820_v32 }
  0xbf   :  { %2429 = vmatmul.mubr.bf16.gmra.mrb[12].mxu0 %v2859_v62 }
  0xc0   :  { %2432 = vmatprep.mubr.bf16.mxu0 %v2860_v1 }
  0xc5   :  { %2369 = vmatmul.mubr.bf16.gmra.mrb[28].mxu1 %v2821_v33 }
  0xc6   :  { %2372 = vmatprep.mubr.bf16.mxu1 %v2822_v34  ;;  %v2884_v34 = vld [vmem:[#allocation7 + $0xf0] sm:$0xff]  }
  0xc7   :  { %2433 = vmatmul.mubr.bf16.gmra.mrb[16].mxu0 %v2861_v2 }
  0xc8   :  { %2436 = vmatprep.mubr.bf16.mxu0 %v2862_v3 }
  0xcd   :  { %2373 = vmatmul.mubr.bf16.gmra.mrb[32].mxu1 %v2823_v35 }
  0xce   :  { %2376 = vmatprep.mubr.bf16.mxu1 %v2824_v36  ;;  %v2885_v36 = vld [vmem:[#allocation7 + $0xf8] sm:$0xff]  }
  0xcf   :  { %2437 = vmatmul.mubr.bf16.gmra.mrb[20].mxu0 %v2863_v4 }
  0xd0   :  { %2440 = vmatprep.mubr.bf16.mxu0 %v2864_v5 }
  0xd5   :  { %2377 = vmatmul.mubr.bf16.gmra.mrb[36].mxu1 %v2825_v38 }
  0xd6   :  { %2380 = vmatprep.mubr.bf16.mxu1 %v2826_v40 }
  0xd7   :  { %2441 = vmatmul.mubr.bf16.gmra.mrb[24].mxu0 %v2865_v6 }
  0xd8   :  { %2444 = vmatprep.mubr.bf16.mxu0 %v2866_v7 }
  0xdd   :  { %2381 = vmatmul.mubr.bf16.gmra.mrb[40].mxu1 %v2828_v42 }
  0xde   :  { %2384 = vmatprep.mubr.bf16.mxu1 %v2830_v44 }
  0xdf   :  { %2445 = vmatmul.mubr.bf16.gmra.mrb[28].mxu0 %v2867_v8 }
  0xe0   :  { %2448 = vmatprep.mubr.bf16.mxu0 %v2868_v9 }
  0xe5   :  { %2385 = vmatmul.mubr.bf16.gmra.mrb[44].mxu1 %v2832_v46 }
  0xe6   :  { %2388 = vmatprep.mubr.bf16.mxu1 %v2834_v48 }
  0xe7   :  { %2449 = vmatmul.mubr.bf16.gmra.mrb[32].mxu0 %v2869_v10 }
  0xe8   :  { %2452 = vmatprep.mubr.bf16.mxu0 %v2870_v11 }
  0xed   :  { %2389 = vmatmul.mubr.bf16.gmra.mrb[48].mxu1 %v2836_v50 }
  0xee   :  { %2392 = vmatprep.mubr.bf16.mxu1 %v2840_v52 }
  0xef   :  { %2453 = vmatmul.mubr.bf16.gmra.mrb[36].mxu0 %v2871_v12 }
  0xf0   :  { %2456 = vmatprep.mubr.bf16.mxu0 %v2872_v13 }
  0xf5   :  { %2393 = vmatmul.mubr.bf16.gmra.mrb[52].mxu1 %v2841_v55 }
  0xf6   :  { %2396 = vmatprep.mubr.bf16.mxu1 %v2842_v56 }
  0xf7   :  { %2457 = vmatmul.mubr.bf16.gmra.mrb[40].mxu0 %v2873_v14 }
  0xf8   :  { %2460 = vmatprep.mubr.bf16.mxu0 %v2874_v15 }
  0xfd   :  { %2397 = vmatmul.mubr.bf16.gmra.mrb[56].mxu1 %v2843_v59 }
  0xfe   :  { %2400 = vmatprep.mubr.bf16.mxu1 %v2844_v60 }
  0xff   :  { %2461 = vmatmul.mubr.bf16.gmra.mrb[44].mxu0 %v2875_v16 }
 0x100   :  { %2464 = vmatprep.mubr.bf16.mxu0 %v2876_v17 }
 0x105   :  { %2401 = vmatmul.mubr.bf16.gmra.mrb[60].mxu1 %v2845_v63 }
 0x107   :  { %2465 = vmatmul.mubr.bf16.gmra.mrb[48].mxu0 %v2877_v18 }
 0x108   :  { %2468 = vmatprep.mubr.bf16.mxu0 %v2878_v19 }
 0x10f   :  { %2469 = vmatmul.mubr.bf16.gmra.mrb[52].mxu0 %v2879_v20 }
 0x110   :  { %2472 = vmatprep.mubr.bf16.mxu0 %v2880_v21 }
 0x117   :  { %2473 = vmatmul.mubr.bf16.gmra.mrb[56].mxu0 %v2881_v22 }
 0x118   :  { %2476 = vmatprep.mubr.bf16.mxu0 %v2882_v23 }
 0x11f   :  { %2477 = vmatmul.mubr.bf16.gmra.mrb[60].mxu0 %v2883_v24 }
 0x120   :  { %2480 = vmatprep.mubr.bf16.mxu0 %v2884_v34 }
 0x127   :  { %2481 = vmatmul.mubr.bf16.gmra.mrb[64].mxu0 %v2885_v36 }
 0x160   :  { %v2342_v25 = vpop.f32.mrb[0].mxu1 }
 0x161   :  { %v654_v27 = vpop.f32.mrb[1].mxu1  ;;  %v3238_v29 = vadd.f32 %v2342_v25, %v3235_v26 }
 0x162   :  { %v2343_v28 = vpop.f32.mrb[2].mxu1  ;;  %v655_v32 = vadd.f32 %v3235_v26, %v654_v27  ;;  %v223_v4 = vpop.f32.mrb[0].mxu0 }
 0x163   :  { %v3241_v30 = vadd.f32 %v2343_v28, %v3235_v26  ;;  %v657_v31 = vpop.f32.mrb[3].mxu1  ;;  %v3296_v6 = vadd.f32 %v1988_v61, %v223_v4  ;;  %v2322_v7 = vpop.f32.mrb[1].mxu0 }
 0x164   :  { %v658_v33 = vadd.f32 %v3235_v26, %v657_v31  ;;  %v226_v9 = vpop.f32.mrb[2].mxu0 }
 0x165   :  { %v2630_v35 = vpack.c.bf16 %v3241_v30, %v3238_v29  ;;  %2200 = vmatprep.mubr.f32.mxu1 %v3296_v6  ;;  %2234 = vmatprep.mubr.f32.mxu0 %v3296_v6  ;;  %v2323_v10 = vpop.f32.mrb[3].mxu0 }
 0x166   :  { %v2626_v37 = vpack.c.bf16 %v658_v33, %v655_v32 }
 0x168   :  { %v2346_v38 = vpop.f32.mrb[4].mxu1 }
 0x169   :  { %v670_v39 = vpop.f32.mrb[5].mxu1  ;;  %v3248_v41 = vadd.f32 %v2346_v38, %v3235_v26 }
 0x16a   :  { %v2347_v40 = vpop.f32.mrb[6].mxu1  ;;  %v3254_v44 = vadd.f32 %v3235_v26, %v670_v39 }
 0x16b   :  { %v3251_v42 = vadd.f32 %v2347_v40, %v3235_v26  ;;  %v673_v43 = vpop.f32.mrb[7].mxu1 }
 0x16c   :  { %v3257_v45 = vadd.f32 %v3235_v26, %v673_v43 }
 0x16d   :  { %v2638_v46 = vpack.c.bf16 %v3251_v42, %v3248_v41 }
 0x16e   :  { %v2634_v47 = vpack.c.bf16 %v3257_v45, %v3254_v44 }
 0x170   :  { %v2350_v48 = vpop.f32.mrb[8].mxu1 }
 0x171   :  { %v686_v49 = vpop.f32.mrb[9].mxu1  ;;  %v3264_v51 = vadd.f32 %v2350_v48, %v3235_v26 }
 0x172   :  { %v2351_v50 = vpop.f32.mrb[10].mxu1  ;;  %v3270_v54 = vadd.f32 %v3235_v26, %v686_v49 }
 0x173   :  { %v3267_v52 = vadd.f32 %v2351_v50, %v3235_v26  ;;  %v689_v53 = vpop.f32.mrb[11].mxu1 }
 0x174   :  { %v3273_v55 = vadd.f32 %v3235_v26, %v689_v53 }
 0x175   :  { %v2646_v56 = vpack.c.bf16 %v3267_v52, %v3264_v51 }
 0x176   :  { %v2642_v57 = vpack.c.bf16 %v3273_v55, %v3270_v54 }
 0x178   :  { %v2354_v58 = vpop.f32.mrb[12].mxu1 }
 0x179   :  { %v702_v59 = vpop.f32.mrb[13].mxu1  ;;  %v3283_v62 = vadd.f32 %v2354_v58, %v3235_v26 }
 0x17a   :  { %v2355_v60 = vpop.f32.mrb[14].mxu1  ;;  %v3289_v2 = vadd.f32 %v3235_v26, %v702_v59 }
 0x17b   :  { %v3286_v63 = vadd.f32 %v2355_v60, %v3235_v26  ;;  %v705_v1 = vpop.f32.mrb[15].mxu1 }
 0x17c   :  { %v3292_v3 = vadd.f32 %v3235_v26, %v705_v1 }
 0x17d   :  { %v2654_v5 = vpack.c.bf16 %v3286_v63, %v3283_v62 }
 0x17e   :  { %v2650_v8 = vpack.c.bf16 %v3292_v3, %v3289_v2 }
 0x180   :  { %v2358_v11 = vpop.f32.mrb[16].mxu1 }
 0x181   :  { %v718_v12 = vpop.f32.mrb[17].mxu1  ;;  %v727_v14 = vadd.f32 %v2358_v11, %v3235_v26 }
 0x182   :  { %v2359_v13 = vpop.f32.mrb[18].mxu1  ;;  %v719_v17 = vadd.f32 %v3235_v26, %v718_v12 }
 0x183   :  { %v730_v15 = vadd.f32 %v2359_v13, %v3235_v26  ;;  %v721_v16 = vpop.f32.mrb[19].mxu1 }
 0x184   :  { %v722_v18 = vadd.f32 %v3235_v26, %v721_v16 }
 0x185   :  { %v2628_v19 = vpack.c.bf16 %v730_v15, %v727_v14 }
 0x186   :  { %v2624_v20 = vpack.c.bf16 %v722_v18, %v719_v17 }
 0x188   :  { %v2362_v21 = vpop.f32.mrb[20].mxu1  ;;  %2625 = vmatprep.subr.bf16.mxu1 %v2624_v20 }
 0x189   :  { %v734_v22 = vpop.f32.mrb[21].mxu1  ;;  %2627 = vmatpush3.bf16.xpose.msra.mxu1 %v2626_v37  ;;  %v743_v24 = vadd.f32 %v2362_v21, %v3235_v26 }
 0x18a   :  { %v2363_v23 = vpop.f32.mrb[22].mxu1  ;;  %2629 = vmatprep.subr.bf16.mxu1 %v2628_v19  ;;  %v735_v28 = vadd.f32 %v3235_v26, %v734_v22 }
 0x18b   :  { %v746_v25 = vadd.f32 %v2363_v23, %v3235_v26  ;;  %v737_v27 = vpop.f32.mrb[23].mxu1 }
 0x18c   :  { %v738_v31 = vadd.f32 %v3235_v26, %v737_v27 }
 0x18d   :  { %v2636_v32 = vpack.c.bf16 %v746_v25, %v743_v24 }
 0x18e   :  { %v2632_v33 = vpack.c.bf16 %v738_v31, %v735_v28 }
 0x190   :  { %v2366_v34 = vpop.f32.mrb[24].mxu1 }
 0x191   :  { %v750_v36 = vpop.f32.mrb[25].mxu1  ;;  %2631 = vmatpush3.bf16.xpose.msra.mxu1 %v2630_v35  ;;  %v759_v38 = vadd.f32 %v2366_v34, %v3235_v26 }
 0x192   :  { %v2367_v37 = vpop.f32.mrb[26].mxu1  ;;  %2633 = vmatprep.subr.bf16.mxu1 %v2632_v33  ;;  %v751_v43 = vadd.f32 %v3235_v26, %v750_v36 }
 0x193   :  { %v762_v39 = vadd.f32 %v2367_v37, %v3235_v26  ;;  %v753_v40 = vpop.f32.mrb[27].mxu1 }
 0x194   :  { %v754_v48 = vadd.f32 %v3235_v26, %v753_v40 }
 0x195   :  { %v2644_v49 = vpack.c.bf16 %v762_v39, %v759_v38  ;;  %v3406_v39 = vld [vmem:[%s3724_s8] ss:$0 sm:$0xff] }
 0x196   :  { %v2640_v50 = vpack.c.bf16 %v754_v48, %v751_v43  ;;  %v2422_v43 = vpop.f32.mrb[4].mxu0  ;;  %v3076_v48 = vmov 0.0|0.0  }
 0x198   :  { %v2370_v53 = vpop.f32.mrb[28].mxu1 }
 0x199   :  { %v766_v58 = vpop.f32.mrb[29].mxu1  ;;  %2635 = vmatpush3.bf16.xpose.msra.mxu1 %v2634_v47  ;;  %v775_v30 = vadd.f32 %v2370_v53, %v3235_v26 }
 0x19a   :  { %v2371_v29 = vpop.f32.mrb[30].mxu1  ;;  %2637 = vmatprep.subr.bf16.mxu1 %v2636_v32  ;;  %v767_v60 = vadd.f32 %v3235_v26, %v766_v58  ;;  %v1215_v58 = vadd.f32 %v2422_v43, %v3406_v39 }
 0x19b   :  { %v778_v35 = vadd.f32 %v2371_v29, %v3235_v26  ;;  %v769_v59 = vpop.f32.mrb[31].mxu1  ;;  %v1206_v29 = vpop.f32.mrb[5].mxu0 }
 0x19c   :  { %v770_v61 = vadd.f32 %v3235_v26, %v769_v59 }
 0x19d   :  { %v2652_v1 = vpack.c.bf16 %v778_v35, %v775_v30  ;;  %v2423_v30 = vpop.f32.mrb[6].mxu0 }
 0x19e   :  { %v2648_v4 = vpack.c.bf16 %v770_v61, %v767_v60  ;;  %v1218_v59 = vadd.f32 %v2423_v30, %v3406_v39  ;;  %v1209_v60 = vpop.f32.mrb[7].mxu0 }
 0x1a0   :  { %v2374_v7 = vpop.f32.mrb[32].mxu1 }
 0x1a1   :  { %v782_v9 = vpop.f32.mrb[33].mxu1  ;;  %2639 = vmatpush3.bf16.xpose.msra.mxu1 %v2638_v46  ;;  %v3328_v45 = vadd.f32 %v2374_v7, %v3235_v26 }
 0x1a2   :  { %v2375_v44 = vpop.f32.mrb[34].mxu1  ;;  %2641 = vmatprep.subr.bf16.mxu1 %v2640_v50  ;;  %v3334_v11 = vadd.f32 %v3235_v26, %v782_v9 }
 0x1a3   :  { %v3331_v47 = vadd.f32 %v2375_v44, %v3235_v26  ;;  %v785_v10 = vpop.f32.mrb[35].mxu1 }
 0x1a4   :  { %v3337_v12 = vadd.f32 %v3235_v26, %v785_v10 }
 0x1a5   :  { %v2662_v13 = vpack.c.bf16 %v3331_v47, %v3328_v45 }
 0x1a6   :  { %v2658_v41 = vpack.c.bf16 %v3337_v12, %v3334_v11 }
 0x1a8   :  { %v2378_v42 = vpop.f32.mrb[36].mxu1 }
 0x1a9   :  { %v798_v46 = vpop.f32.mrb[37].mxu1  ;;  %2643 = vmatpush3.bf16.xpose.msra.mxu1 %v2642_v57  ;;  %v3347_v15 = vadd.f32 %v2378_v42, %v3235_v26 }
 0x1aa   :  { %v2379_v14 = vpop.f32.mrb[38].mxu1  ;;  %2645 = vmatprep.subr.bf16.mxu1 %v2644_v49  ;;  %v3353_v18 = vadd.f32 %v3235_v26, %v798_v46 }
 0x1ab   :  { %v3350_v16 = vadd.f32 %v2379_v14, %v3235_v26  ;;  %v801_v17 = vpop.f32.mrb[39].mxu1  ;;  %v2426_v14 = vpop.f32.mrb[8].mxu0 }
 0x1ac   :  { %v3356_v19 = vadd.f32 %v3235_v26, %v801_v17 }
 0x1ad   :  { %v2670_v20 = vpack.c.bf16 %v3350_v16, %v3347_v15 }
 0x1ae   :  { %v2666_v54 = vpack.c.bf16 %v3356_v19, %v3353_v18 }
 0x1b0   :  { %v2382_v55 = vpop.f32.mrb[40].mxu1 }
 0x1b1   :  { %v814_v57 = vpop.f32.mrb[41].mxu1  ;;  %2647 = vmatpush3.bf16.xpose.msra.mxu1 %v2646_v56  ;;  %v3366_v22 = vadd.f32 %v2382_v55, %v3235_v26 }
 0x1b2   :  { %v2383_v21 = vpop.f32.mrb[42].mxu1  ;;  %2649 = vmatprep.subr.bf16.mxu1 %v2648_v4  ;;  %v3372_v25 = vadd.f32 %v3235_v26, %v814_v57  ;;  %v2692_v4 = vpack.c.bf16 %v1218_v59, %v1215_v58  ;;  %v1231_v57 = vadd.f32 %v2426_v14, %v3406_v39 }
 0x1b3   :  { %v3369_v23 = vadd.f32 %v2383_v21, %v3235_v26  ;;  %v817_v24 = vpop.f32.mrb[43].mxu1  ;;  %v1222_v21 = vpop.f32.mrb[9].mxu0 }
 0x1b4   :  { %v3375_v27 = vadd.f32 %v3235_v26, %v817_v24  ;;  %v1223_v12 = vadd.f32 %v3406_v39, %v1222_v21 }
 0x1b5   :  { %v2678_v28 = vpack.c.bf16 %v3369_v23, %v3366_v22 }
 0x1b6   :  { %v2674_v51 = vpack.c.bf16 %v3375_v27, %v3372_v25 }
 0x1b8   :  { %v2386_v52 = vpop.f32.mrb[44].mxu1 }
 0x1b9   :  { %v830_v56 = vpop.f32.mrb[45].mxu1  ;;  %2651 = vmatpush3.bf16.xpose.msra.mxu1 %v2650_v8  ;;  %v3385_v32 = vadd.f32 %v2386_v52, %v3235_v26 }
 0x1ba   :  { %v2387_v31 = vpop.f32.mrb[46].mxu1  ;;  %2653 = vmatprep.subr.bf16.mxu1 %v2652_v1  ;;  %v3391_v36 = vadd.f32 %v3235_v26, %v830_v56  ;;  %v1210_v1 = vadd.f32 %v3406_v39, %v1209_v60 }
 0x1bb   :  { %v3388_v33 = vadd.f32 %v2387_v31, %v3235_v26  ;;  %v833_v34 = vpop.f32.mrb[47].mxu1 }
 0x1bc   :  { %v3394_v37 = vadd.f32 %v3235_v26, %v833_v34 }
 0x1bd   :  { %v2686_v38 = vpack.c.bf16 %v3388_v33, %v3385_v32 }
 0x1be   :  { %v2682_v2 = vpack.c.bf16 %v3394_v37, %v3391_v36 }
 0x1c0   :  { %v2390_v3 = vpop.f32.mrb[48].mxu1 }
 0x1c1   :  { %v846_v8 = vpop.f32.mrb[49].mxu1  ;;  %2655 = vmatpush3.bf16.xpose.msra.mxu1 %v2654_v5  ;;  %v855_v49 = vadd.f32 %v2390_v3, %v3235_v26  ;;  %v1207_v5 = vadd.f32 %v3406_v39, %v1206_v29 }
 0x1c2   :  { %v2391_v40 = vpop.f32.mrb[50].mxu1  ;;  %2688 = vmatprep.subr.bf16.mxu1 %v3076_v48  ;;  %v847_v62 = vadd.f32 %v3235_v26, %v846_v8 }
 0x1c3   :  { %v858_v50 = vadd.f32 %v2391_v40, %v3235_v26  ;;  %v849_v53 = vpop.f32.mrb[51].mxu1  ;;  %v2689_v9 = vpack.c.bf16 %v1210_v1, %v1207_v5 }
 0x1c4   :  { %v850_v63 = vadd.f32 %v3235_v26, %v849_v53 }
 0x1c5   :  { %v2660_v35 = vpack.c.bf16 %v858_v50, %v855_v49 }
 0x1c6   :  { %v2656_v61 = vpack.c.bf16 %v850_v63, %v847_v62 }
 0x1c8   :  { %2657 = vmatprep.subr.bf16.mxu0 %v2656_v61  ;;  %v2394_v7 = vpop.f32.mrb[52].mxu1  ;;  %2201 = vmatmul.mubr.f32.vlgmr.msra.gmra.mrb[64].mxu1 %v3296_v6 }
 0x1c9   :  { %2659 = vmatpush3.bf16.xpose.msra.mxu0 %v2658_v41  ;;  %v871_v44 = vadd.f32 %v2394_v7, %v3235_v26  ;;  %v862_v10 = vpop.f32.mrb[53].mxu1  ;;  %2516 = vmatprep.mubr.msk.f32.mxu1 %vm3075_vm0, %v3074_v0  ;;  %v2427_v41 = vpop.f32.mrb[10].mxu0 }
 0x1ca   :  { %2661 = vmatprep.subr.bf16.mxu0 %v2660_v35  ;;  %v863_v42 = vadd.f32 %v3235_v26, %v862_v10  ;;  %v2395_v46 = vpop.f32.mrb[54].mxu1  ;;  %2690 = vmatpush3.bf16.msra.mxu1 %v2689_v9  ;;  %v1234_v52 = vadd.f32 %v2427_v41, %v3406_v39  ;;  %v1225_v56 = vpop.f32.mrb[11].mxu0 }
 0x1cb   :  { %v874_v17 = vadd.f32 %v2395_v46, %v3235_v26  ;;  %v865_v55 = vpop.f32.mrb[55].mxu1  ;;  %2691 = vmatprep.subr.bf16.mxu1 %v3076_v48  ;;  %v1226_v34 = vadd.f32 %v3406_v39, %v1225_v56  ;;  %v2430_v58 = vpop.f32.mrb[12].mxu0 }
 0x1cc   :  { %v866_v11 = vadd.f32 %v3235_v26, %v865_v55  ;;  %v2698_v3 = vpack.c.bf16 %v1234_v52, %v1231_v57  ;;  %v1247_v63 = vadd.f32 %v2430_v58, %v3406_v39  ;;  %v1238_v5 = vpop.f32.mrb[13].mxu0 }
 0x1cd   :  { %v2668_v24 = vpack.c.bf16 %v874_v17, %v871_v44  ;;  %v2695_v40 = vpack.c.bf16 %v1226_v34, %v1223_v12  ;;  %v1239_v47 = vadd.f32 %v3406_v39, %v1238_v5 }
 0x1ce   :  { %v2664_v31 = vpack.c.bf16 %v866_v11, %v863_v42  ;;  %2693 = vmatpush3.bf16.msra.mxu1 %v2692_v4 }
 0x1cf   :  { %2694 = vmatprep.subr.bf16.mxu1 %v3076_v48 }
 0x1d0   :  { %v2398_v8 = vpop.f32.mrb[56].mxu1 }
 0x1d1   :  { %2663 = vmatpush3.bf16.xpose.msra.mxu0 %v2662_v13  ;;  %v887_v43 = vadd.f32 %v2398_v8, %v3235_v26  ;;  %v878_v49 = vpop.f32.mrb[57].mxu1  ;;  %v2431_v13 = vpop.f32.mrb[14].mxu0 }
 0x1d2   :  { %2665 = vmatprep.subr.bf16.mxu0 %v2664_v31  ;;  %v879_v50 = vadd.f32 %v3235_v26, %v878_v49  ;;  %v2399_v53 = vpop.f32.mrb[58].mxu1  ;;  %2696 = vmatpush3.bf16.msra.mxu1 %v2695_v40  ;;  %v1250_v35 = vadd.f32 %v2431_v13, %v3406_v39  ;;  %v1241_v59 = vpop.f32.mrb[15].mxu0 }
 0x1d3   :  { %v890_v29 = vadd.f32 %v2399_v53, %v3235_v26  ;;  %v881_v62 = vpop.f32.mrb[59].mxu1  ;;  %2697 = vmatprep.subr.bf16.mxu1 %v3076_v48  ;;  %v1242_v61 = vadd.f32 %v3406_v39, %v1241_v59  ;;  %v2434_v18 = vpop.f32.mrb[16].mxu0 }
 0x1d4   :  { %v882_v45 = vadd.f32 %v3235_v26, %v881_v62  ;;  %v2704_v1 = vpack.c.bf16 %v1250_v35, %v1247_v63  ;;  %v1254_v19 = vpop.f32.mrb[17].mxu0  ;;  %v1263_v16 = vadd.f32 %v2434_v18, %v3406_v39 }
 0x1d5   :  { %v2676_v30 = vpack.c.bf16 %v890_v29, %v887_v43  ;;  %v2701_v7 = vpack.c.bf16 %v1242_v61, %v1239_v47 }
 0x1d6   :  { %v2672_v60 = vpack.c.bf16 %v882_v45, %v879_v50  ;;  %2699 = vmatpush3.bf16.msra.mxu1 %v2698_v3 }
 0x1d7   :  { %2700 = vmatprep.subr.bf16.mxu1 %v3076_v48 }
 0x1d8   :  { %v2402_v4 = vpop.f32.mrb[60].mxu1 }
 0x1d9   :  { %2667 = vmatpush3.bf16.xpose.msra.mxu0 %v2666_v54  ;;  %v903_v9 = vadd.f32 %v2402_v4, %v3235_v26  ;;  %v894_v44 = vpop.f32.mrb[61].mxu1  ;;  %v2435_v54 = vpop.f32.mrb[18].mxu0 }
 0x1da   :  { %2669 = vmatprep.subr.bf16.mxu0 %v2668_v24  ;;  %v895_v10 = vadd.f32 %v3235_v26, %v894_v44  ;;  %v2403_v42 = vpop.f32.mrb[62].mxu1  ;;  %2702 = vmatpush3.bf16.msra.mxu1 %v2701_v7  ;;  %v1257_v21 = vpop.f32.mrb[19].mxu0 }
 0x1db   :  { %v906_v46 = vadd.f32 %v2403_v42, %v3235_v26  ;;  %v897_v14 = vpop.f32.mrb[63].mxu1  ;;  %2703 = vmatprep.subr.bf16.mxu1 %v3076_v48  ;;  %v1258_v11 = vadd.f32 %v3406_v39, %v1257_v21  ;;  %v2438_v25 = vpop.f32.mrb[20].mxu0 }
 0x1dc   :  { %v898_v17 = vadd.f32 %v3235_v26, %v897_v14  ;;  %v1255_v26 = vadd.f32 %v3406_v39, %v1254_v19  ;;  %v1270_v27 = vpop.f32.mrb[21].mxu0  ;;  %v1279_v23 = vadd.f32 %v2438_v25, %v3406_v39 }
 0x1dd   :  { %v2684_v55 = vpack.c.bf16 %v906_v46, %v903_v9  ;;  %v2439_v12 = vpop.f32.mrb[22].mxu0  ;;  %v1271_v24 = vadd.f32 %v3406_v39, %v1270_v27 }
 0x1de   :  { %v2680_v57 = vpack.c.bf16 %v898_v17, %v895_v10  ;;  %2705 = vmatpush3.bf16.msra.mxu1 %v2704_v1  ;;  %v2707_v15 = vpack.c.bf16 %v1258_v11, %v1255_v26  ;;  %v1273_v41 = vpop.f32.mrb[23].mxu0 }
 0x1df   :  { %2706 = vmatprep.subr.bf16.mxu1 %v3076_v48  ;;  %v1274_v52 = vadd.f32 %v3406_v39, %v1273_v41  ;;  %v2442_v56 = vpop.f32.mrb[24].mxu0 }
 0x1e0   :  { %v1286_v31 = vpop.f32.mrb[25].mxu0  ;;  %v1295_v37 = vadd.f32 %v2442_v56, %v3406_v39 }
 0x1e1   :  { %2671 = vmatpush3.bf16.xpose.msra.mxu0 %v2670_v20  ;;  %v1266_v20 = vadd.f32 %v2435_v54, %v3406_v39  ;;  %v2713_v22 = vpack.c.bf16 %v1274_v52, %v1271_v24  ;;  %v2443_v3 = vpop.f32.mrb[26].mxu0  ;;  %v1287_v40 = vadd.f32 %v3406_v39, %v1286_v31 }
 0x1e2   :  { %2673 = vmatprep.subr.bf16.mxu0 %v2672_v60  ;;  %2708 = vmatpush3.bf16.msra.mxu1 %v2707_v15  ;;  %v1289_v8 = vpop.f32.mrb[27].mxu0 }
 0x1e3   :  { %2709 = vmatprep.subr.bf16.mxu1 %v3076_v48  ;;  %v1290_v43 = vadd.f32 %v3406_v39, %v1289_v8  ;;  %v2446_v49 = vpop.f32.mrb[28].mxu0 }
 0x1e4   :  { %v1302_v50 = vpop.f32.mrb[29].mxu0  ;;  %v1311_v33 = vadd.f32 %v2446_v49, %v3406_v39 }
 0x1e5   :  { %v2719_v36 = vpack.c.bf16 %v1290_v43, %v1287_v40  ;;  %v2447_v58 = vpop.f32.mrb[30].mxu0  ;;  %v1303_v62 = vadd.f32 %v3406_v39, %v1302_v50 }
 0x1e6   :  { %v1305_v29 = vpop.f32.mrb[31].mxu0 }
 0x1e7   :  { %v1306_v63 = vadd.f32 %v3406_v39, %v1305_v29  ;;  %v2450_v5 = vpop.f32.mrb[32].mxu0 }
 0x1e8   :  { %v1318_v45 = vpop.f32.mrb[33].mxu0  ;;  %v1327_v60 = vadd.f32 %v2450_v5, %v3406_v39 }
 0x1e9   :  { %2675 = vmatpush3.bf16.xpose.msra.mxu0 %v2674_v51  ;;  %v2710_v51 = vpack.c.bf16 %v1266_v20, %v1263_v16  ;;  %v2725_v32 = vpack.c.bf16 %v1306_v63, %v1303_v62 }
 0x1ea   :  { %2677 = vmatprep.subr.bf16.mxu0 %v2676_v30  ;;  %v1319_v30 = vadd.f32 %v3406_v39, %v1318_v45 }
 0x1eb   :  { %2711 = vmatpush3.bf16.msra.mxu1 %v2710_v51 }
 0x1ec   :  { %2736 = vmatprep.subr.bf16.mxu1 %v3076_v48 }
 0x1f1   :  { %2679 = vmatpush3.bf16.xpose.msra.mxu0 %v2678_v28  ;;  %v1282_v28 = vadd.f32 %v2439_v12, %v3406_v39 }
 0x1f2   :  { %2681 = vmatprep.subr.bf16.mxu0 %v2680_v57 }
 0x1f3   :  { %v2716_v34 = vpack.c.bf16 %v1282_v28, %v1279_v23 }
 0x1f9   :  { %2683 = vmatpush3.bf16.xpose.msra.mxu0 %v2682_v2  ;;  %v1298_v2 = vadd.f32 %v2443_v3, %v3406_v39 }
 0x1fa   :  { %2685 = vmatprep.subr.bf16.mxu0 %v2684_v55 }
 0x1fb   :  { %v2722_v53 = vpack.c.bf16 %v1298_v2, %v1295_v37 }
 0x201   :  { %2687 = vmatpush3.bf16.xpose.msra.mxu0 %v2686_v38  ;;  %v1314_v38 = vadd.f32 %v2447_v58, %v3406_v39 }
 0x202   :  { %2712 = vmatprep.subr.bf16.mxu0 %v3076_v48 }
 0x203   :  { %v2728_v47 = vpack.c.bf16 %v1314_v38, %v1311_v33 }
 0x208   :  { %2235 = vmatmul.mubr.f32.vlgmr.msra.gmra.mrb[68].mxu0 %v3296_v6  ;;  %v2451_v6 = vpop.f32.mrb[34].mxu0 }
 0x209   :  { %2714 = vmatpush3.bf16.msra.mxu0 %v2713_v22  ;;  %2551 = vmatprep.mubr.msk.f32.mxu0 %vm3075_vm0, %v3074_v0  ;;  %v1321_v13 = vpop.f32.mrb[35].mxu0  ;;  %v1330_v61 = vadd.f32 %v2451_v6, %v3406_v39 }
 0x20a   :  { %2715 = vmatprep.subr.bf16.mxu0 %v3076_v48  ;;  %v1322_v35 = vadd.f32 %v3406_v39, %v1321_v13  ;;  %v2454_v4 = vpop.f32.mrb[36].mxu0 }
 0x20b   :  { %v2734_v1 = vpack.c.bf16 %v1330_v61, %v1327_v60  ;;  %v1334_v7 = vpop.f32.mrb[37].mxu0  ;;  %v3502_v10 = vadd.f32 %v2454_v4, %v3406_v39 }
 0x20c   :  { %v2731_v59 = vpack.c.bf16 %v1322_v35, %v1319_v30  ;;  %v2455_v9 = vpop.f32.mrb[38].mxu0  ;;  %v3505_v42 = vadd.f32 %v3406_v39, %v1334_v7 }
 0x20d   :  { %2717 = vmatpush3.bf16.msra.mxu0 %v2716_v34  ;;  %v1337_v44 = vpop.f32.mrb[39].mxu0  ;;  %v3508_v46 = vadd.f32 %v2455_v9, %v3406_v39 }
 0x20e   :  { %2718 = vmatprep.subr.bf16.mxu0 %v3076_v48  ;;  %v3511_v14 = vadd.f32 %v3406_v39, %v1337_v44  ;;  %v2458_v57 = vpop.f32.mrb[40].mxu0 }
 0x20f   :  { %v2740_v17 = vpack.c.bf16 %v3508_v46, %v3502_v10  ;;  %v1350_v18 = vpop.f32.mrb[41].mxu0  ;;  %v3520_v21 = vadd.f32 %v2458_v57, %v3406_v39 }
 0x210   :  { %v2737_v55 = vpack.c.bf16 %v3511_v14, %v3505_v42  ;;  %v2459_v19 = vpop.f32.mrb[42].mxu0  ;;  %v3523_v26 = vadd.f32 %v3406_v39, %v1350_v18 }
 0x211   :  { %2720 = vmatpush3.bf16.msra.mxu0 %v2719_v36  ;;  %v1353_v54 = vpop.f32.mrb[43].mxu0  ;;  %v3526_v11 = vadd.f32 %v2459_v19, %v3406_v39 }
 0x212   :  { %2721 = vmatprep.subr.bf16.mxu0 %v3076_v48  ;;  %v3529_v15 = vadd.f32 %v3406_v39, %v1353_v54  ;;  %v2462_v25 = vpop.f32.mrb[44].mxu0 }
 0x213   :  { %v1366_v27 = vpop.f32.mrb[45].mxu0  ;;  %v3537_v41 = vadd.f32 %v2462_v25, %v3406_v39 }
 0x214   :  { %v2743_v20 = vpack.c.bf16 %v3529_v15, %v3523_v26  ;;  %v2463_v51 = vpop.f32.mrb[46].mxu0  ;;  %v3540_v24 = vadd.f32 %v3406_v39, %v1366_v27 }
 0x215   :  { %2723 = vmatpush3.bf16.msra.mxu0 %v2722_v53  ;;  %v1369_v12 = vpop.f32.mrb[47].mxu0  ;;  %v3543_v52 = vadd.f32 %v2463_v51, %v3406_v39 }
 0x216   :  { %2724 = vmatprep.subr.bf16.mxu0 %v3076_v48  ;;  %v3546_v22 = vadd.f32 %v3406_v39, %v1369_v12  ;;  %v2466_v23 = vpop.f32.mrb[48].mxu0 }
 0x217   :  { %v3553_v31 = vadd.f32 %v2466_v23, %v3406_v39  ;;  %v1382_v34 = vpop.f32.mrb[49].mxu0 }
 0x218   :  { %v3556_v3 = vadd.f32 %v3406_v39, %v1382_v34  ;;  %v2467_v8 = vpop.f32.mrb[50].mxu0 }
 0x219   :  { %2726 = vmatpush3.bf16.msra.mxu0 %v2725_v32  ;;  %v3559_v40 = vadd.f32 %v2467_v8, %v3406_v39  ;;  %v1385_v43 = vpop.f32.mrb[51].mxu0 }
 0x21a   :  { %2727 = vmatprep.subr.bf16.mxu0 %v3076_v48  ;;  %v3562_v36 = vadd.f32 %v3406_v39, %v1385_v43  ;;  %v2470_v37 = vpop.f32.mrb[52].mxu0 }
 0x21b   :  { %v3567_v49 = vadd.f32 %v2470_v37, %v3406_v39  ;;  %v1398_v50 = vpop.f32.mrb[53].mxu0 }
 0x21c   :  { %v3572_v58 = vadd.f32 %v3406_v39, %v1398_v50  ;;  %v2471_v29 = vpop.f32.mrb[54].mxu0 }
 0x21d   :  { %2729 = vmatpush3.bf16.msra.mxu0 %v2728_v47  ;;  %v3575_v62 = vadd.f32 %v2471_v29, %v3406_v39  ;;  %v1401_v63 = vpop.f32.mrb[55].mxu0 }
 0x21e   :  { %2730 = vmatprep.subr.bf16.mxu0 %v3076_v48  ;;  %v3578_v32 = vadd.f32 %v3406_v39, %v1401_v63  ;;  %v2474_v33 = vpop.f32.mrb[56].mxu0 }
 0x21f   :  { %v2764_v38 = vpack.c.bf16 %v3575_v62, %v3567_v49  ;;  %v3583_v5 = vadd.f32 %v2474_v33, %v3406_v39  ;;  %v1414_v45 = vpop.f32.mrb[57].mxu0  ;;  %v3729_v49 = vpack.c.bf16 %v3546_v22, %v3540_v24 }
 0x220   :  { %v2761_v47 = vpack.c.bf16 %v3578_v32, %v3572_v58  ;;  %v3588_v6 = vadd.f32 %v3406_v39, %v1414_v45  ;;  %v2475_v13 = vpop.f32.mrb[58].mxu0 }
 0x221   :  { %2732 = vmatpush3.bf16.msra.mxu0 %v2731_v59  ;;  %v3591_v30 = vadd.f32 %v2475_v13, %v3406_v39  ;;  %v1417_v35 = vpop.f32.mrb[59].mxu0 }
 0x222   :  { %2733 = vmatprep.subr.bf16.mxu0 %v3076_v48  ;;  %v3594_v59 = vadd.f32 %v3406_v39, %v1417_v35  ;;  %v2478_v60 = vpop.f32.mrb[60].mxu0 }
 0x223   :  { %v1430_v4 = vpop.f32.mrb[61].mxu0  ;;  %v3728_v26 = vpack.c.bf16 %v3591_v30, %v3583_v5  ;;  %v3733_v30 = vpack.c.bf16 %v3562_v36, %v3556_v3 }
 0x224   :  { %v2767_v7 = vpack.c.bf16 %v3594_v59, %v3588_v6  ;;  %v3604_v9 = vadd.f32 %v3406_v39, %v1430_v4  ;;  %v2479_v44 = vpop.f32.mrb[62].mxu0 }
 0x225   :  { %2735 = vmatpush3.bf16.msra.mxu0 %v2734_v1  ;;  %v3599_v1 = vadd.f32 %v2478_v60, %v3406_v39  ;;  %v3607_v57 = vadd.f32 %v2479_v44, %v3406_v39  ;;  %v1433_v18 = vpop.f32.mrb[63].mxu0 }
 0x226   :  { %2760 = vmatprep.subr.bf16.mxu0 %v3076_v48  ;;  %v3610_v19 = vadd.f32 %v3406_v39, %v1433_v18  ;;  %v2482_v54 = vpop.f32.mrb[64].mxu0 }
 0x227   :  { %v3615_v27 = vadd.f32 %v2482_v54, %v3406_v39  ;;  %v1446_v51 = vpop.f32.mrb[65].mxu0  ;;  %v3732_v24 = vpack.c.bf16 %v3607_v57, %v3599_v1 }
 0x228   :  { %v3620_v23 = vadd.f32 %v3406_v39, %v1446_v51  ;;  %v2483_v34 = vpop.f32.mrb[66].mxu0 }
 0x229   :  { %v3623_v8 = vadd.f32 %v2483_v34, %v3406_v39  ;;  %v1449_v43 = vpop.f32.mrb[67].mxu0 }
 0x22a   :  { %v3626_v37 = vadd.f32 %v3406_v39, %v1449_v43 }
 0x22b   :  { %v3736_v59 = vpack.c.bf16 %v3623_v8, %v3615_v27 }
 0x29b   :  { %v1527_v63 = vpop.f32.mrb[64].mxu1 }
 0x29c   :  { %v1603_v33 = vrot.slane %v1527_v63, 4  ;;  %v1529_v45 = vpop.f32.mrb[65].mxu1 }
 0x29d   :  { %v1609_v13 = vrot.slane %v1529_v45, 4 }
 0x29e   :  { %v1604_v35 = vmax.f32 %v1527_v63, %v1603_v33 }
 0x29f   :  { %v1610_v60 = vmax.f32 %v1529_v45, %v1609_v13 }
 0x2a0   :  { %v1605_v4 = vrot.slane %v1604_v35, 2 }
 0x2a1   :  { %v1611_v44 = vrot.slane %v1610_v60, 2 }
 0x2a2   :  { %v1606_v18 = vmax.f32 %v1604_v35, %v1605_v4 }
 0x2a3   :  { %v1612_v54 = vmax.f32 %v1610_v60, %v1611_v44 }
 0x2a4   :  { %v1607_v51 = vrot.slane %v1606_v18, 1 }
 0x2a5   :  { %v1613_v34 = vrot.slane %v1612_v54, 1 }
 0x2a6   :  { %v1608_v39 = vmax.f32 %v1606_v18, %v1607_v51 }
 0x2a7   :  { %v1614_v43 = vmax.f32 %v1612_v54, %v1613_v34 }
 0x2a8   :  { %v1627_v2 = vsub.f32 %v1527_v63, %v1608_v39 }
 0x2a9   :  { %v1628_v53 = vsub.f32 %v1529_v45, %v1614_v43 }
 0x2aa   :  { %v1631_v50 = vmul.f32 1.442695, %v1627_v2  ;;  %v1671_v2 = vld [vmem:[%s3725_s9] sm:$0xff] }
 0x2ab   :  { %v1633_v25 = vmul.f32 1.442695, %v1628_v53  ;;  %v1673_v53 = vunpack.c.l.bf16 %v1671_v2 }
 0x2ac   :  { %2886 = vpow2.f32 %v1631_v50  ;;  %v1674_v50 = vunpack.c.h.bf16 %v1671_v2 }
 0x2ad   :  { %2888 = vpow2.f32 %v1633_v25 }
 0x2b6   :  { %v2887_v29 = vpop.eup %2886 }
 0x2b7   :  { %v2889_v28 = vpop.eup %2888  ;;  %v1639_v12 = vrot.slane %v2887_v29, 4 }
 0x2b8   :  { %v1645_v56 = vrot.slane %v2889_v28, 4 }
 0x2b9   :  { %v1640_v33 = vadd.f32 %v2887_v29, %v1639_v12 }
 0x2ba   :  { %v1646_v13 = vadd.f32 %v2889_v28, %v1645_v56 }
 0x2bb   :  { %v1641_v61 = vrot.slane %v1640_v33, 2 }
 0x2bc   :  { %v1647_v16 = vrot.slane %v1646_v13, 2 }
 0x2bd   :  { %v1642_v35 = vadd.f32 %v1641_v61, %v1640_v33 }
 0x2be   :  { %v1648_v60 = vadd.f32 %v1647_v16, %v1646_v13 }
 0x2bf   :  { %v1643_v4 = vrot.slane %v1642_v35, 1 }
 0x2c0   :  { %v1649_v44 = vrot.slane %v1648_v60, 1 }
 0x2c1   :  { %v1644_v18 = vadd.f32 %v1643_v4, %v1642_v35 }
 0x2c2   :  { %v1650_v54 = vadd.f32 %v1649_v44, %v1648_v60 }
 0x2c3   :  { %2890 = vrcp.f32 %v1644_v18 }
 0x2c4   :  { %2892 = vrcp.f32 %v1650_v54 }
 0x2cd   :  { %v2891_v25 = vpop.eup %2890 }
 0x2ce   :  { %v2893_v63 = vpop.eup %2892  ;;  %v1667_v12 = vmul.f32 %v2891_v25, %v2887_v29 }
 0x2cf   :  { %v1668_v56 = vmul.f32 %v2893_v63, %v2889_v28 }
 0x2d0   :  { %v1677_v45 = vmul.f32 %v1673_v53, %v1667_v12 }
 0x2d1   :  { %v1678_v51 = vmul.f32 %v1674_v50, %v1668_v56 }
 0x2d2   :  { %2517 = vmatmul.mubr.f32.vlgmr.msra.gmra.mrb[66].mxu1 %v1677_v45 }
 0x2d3   :  { %2738 = vmatpush3.bf16.msra.mxu1 %v2737_v55  ;;  %2552 = vmatmul.mubr.f32.vlgmr.msra.gmra.mrb[70].mxu0 %v1678_v51 }
 0x2d4   :  { %2739 = vmatprep.subr.bf16.mxu1 %v3076_v48  ;;  %2762 = vmatpush3.bf16.msra.mxu0 %v2761_v47 }
 0x2d5   :  { %2763 = vmatprep.subr.bf16.mxu0 %v3076_v48  ;;  %2586 = vmatprep.mubr.msk.f32.mxu1 %vm3075_vm0, %v3074_v0 }
 0x2d6   :  { %2621 = vmatprep.mubr.msk.f32.mxu0 %vm3075_vm0, %v3074_v0 }
 0x2d7   :  { %2741 = vmatpush3.bf16.msra.mxu1 %v2740_v17  ;;  %v3727_v17 = vpack.c.bf16 %v3526_v11, %v3520_v21  ;;  %v3730_v21 = vpack.c.bf16 %v3610_v19, %v3604_v9 }
 0x2d8   :  { %2742 = vmatprep.subr.bf16.mxu1 %v3076_v48  ;;  %2765 = vmatpush3.bf16.msra.mxu0 %v2764_v38  ;;  %v3731_v38 = vpack.c.bf16 %v3543_v52, %v3537_v41  ;;  %v3734_v41 = vpack.c.bf16 %v3626_v37, %v3620_v23  ;;  %v3735_v52 = vpack.c.bf16 %v3559_v40, %v3553_v31  ;;  %v1672_v31 = vld [vmem:[%s3725_s9 + $0x8] sm:$0xff]  ;;  %s3034_s9 = scalar_lea.vmem %s1974_s11, 512 }
 0x2d9   :  { %2766 = vmatprep.subr.bf16.mxu0 %v3076_v48  ;;  %v1675_v40 = vunpack.c.l.bf16 %v1672_v31  ;;  %v1676_v8 = vunpack.c.h.bf16 %v1672_v31  ;;  %p3035_p6 = scmp.ne.s32.totalorder %s1974_s11, %s3034_s9  ;;  %p3040_p8 = scmp.lt.s32.totalorder %s3034_s9, %s3034_s9 }
 0x2db   :  { %v1598_v42 = vpop.f32.mrb[68].mxu0  ;;  %2744 = vmatpush3.bf16.msra.mxu1 %v2743_v20  ;;  %p3041_p9 = por %p3040_p8, %p3039_p7 }
 0x2dc   :  { %v1615_v14 = vrot.slane %v1598_v42, 4  ;;  %v1600_v55 = vpop.f32.mrb[69].mxu0  ;;  %2745 = vmatprep.subr.bf16.mxu1 %v3076_v48  ;;  %2768 = vmatpush3.bf16.msra.mxu0 %v2767_v7 }
 0x2dd   :  { %v1621_v0 = vrot.slane %v1600_v55, 4  ;;  %2769 = vmatprep.subr.bf16.mxu0 %v3076_v48  ;;  %p3042_p10 = pnand %p3041_p9, %p3035_p6 }
 0x2de   :  { %v1616_v10 = vmax.f32 %v1598_v42, %v1615_v14 }
 0x2df   :  { %v1622_v46 = vmax.f32 %v1600_v55, %v1621_v0  ;;  %2747 = vmatpush3.bf16.msra.mxu1 %v3727_v17 }
 0x2e0   :  { %v1617_v16 = vrot.slane %v1616_v10, 2  ;;  %2748 = vmatprep.subr.bf16.mxu1 %v3076_v48  ;;  %2771 = vmatpush3.bf16.msra.mxu0 %v3728_v26 }
 0x2e1   :  { %v1623_v15 = vrot.slane %v1622_v46, 2  ;;  %2772 = vmatprep.subr.bf16.mxu0 %v3076_v48 }
 0x2e2   :  { %v1618_v20 = vmax.f32 %v1616_v10, %v1617_v16 }
 0x2e3   :  { %v1624_v28 = vmax.f32 %v1622_v46, %v1623_v15  ;;  %2750 = vmatpush3.bf16.msra.mxu1 %v3729_v49 }
 0x2e4   :  { %v1619_v58 = vrot.slane %v1618_v20, 1  ;;  %2751 = vmatprep.subr.bf16.mxu1 %v3076_v48  ;;  %2774 = vmatpush3.bf16.msra.mxu0 %v3730_v21 }
 0x2e5   :  { %v1625_v11 = vrot.slane %v1624_v28, 1  ;;  %2775 = vmatprep.subr.bf16.mxu0 %v3076_v48 }
 0x2e6   :  { %v1620_v62 = vmax.f32 %v1618_v20, %v1619_v58 }
 0x2e7   :  { %v1626_v32 = vmax.f32 %v1624_v28, %v1625_v11  ;;  %2753 = vmatpush3.bf16.msra.mxu1 %v3731_v38 }
 0x2e8   :  { %v1629_v5 = vsub.f32 %v1598_v42, %v1620_v62  ;;  %2754 = vmatprep.subr.bf16.mxu1 %v3076_v48  ;;  %2777 = vmatpush3.bf16.msra.mxu0 %v3732_v24 }
 0x2e9   :  { %v1630_v22 = vsub.f32 %v1600_v55, %v1626_v32  ;;  %2778 = vmatprep.subr.bf16.mxu0 %v3076_v48 }
 0x2ea   :  { %v1635_v47 = vmul.f32 1.442695, %v1629_v5 }
 0x2eb   :  { %v1637_v6 = vmul.f32 1.442695, %v1630_v22  ;;  %2756 = vmatpush3.bf16.msra.mxu1 %v3733_v30 }
 0x2ec   :  { %2894 = vpow2.f32 %v1635_v47  ;;  %2757 = vmatprep.subr.bf16.mxu1 %v3076_v48  ;;  %2780 = vmatpush3.bf16.msra.mxu0 %v3734_v41 }
 0x2ed   :  { %2896 = vpow2.f32 %v1637_v6  ;;  %2781 = vmatprep.subr.bf16.mxu0 %v3076_v48 }
 0x2ef   :  { %2759 = vmatpush3.bf16.msra.mxu1 %v3735_v52 }
 0x2f0   :  { %2783 = vmatpush3.bf16.msra.mxu0 %v3736_v59 }
 0x2f6   :  { %v2895_v3 = vpop.eup %2894 }
 0x2f7   :  { %v2897_v36 = vpop.eup %2896  ;;  %v1651_v61 = vrot.slane %v2895_v3, 4 }
 0x2f8   :  { %v1657_v1 = vrot.slane %v2897_v36, 4 }
 0x2f9   :  { %v1652_v7 = vadd.f32 %v2895_v3, %v1651_v61 }
 0x2fa   :  { %v1658_v9 = vadd.f32 %v2897_v36, %v1657_v1 }
 0x2fb   :  { %v1653_v57 = vrot.slane %v1652_v7, 2 }
 0x2fc   :  { %v1659_v19 = vrot.slane %v1658_v9, 2 }
 0x2fd   :  { %v1654_v23 = vadd.f32 %v1653_v57, %v1652_v7 }
 0x2fe   :  { %v1660_v37 = vadd.f32 %v1659_v19, %v1658_v9 }
 0x2ff   :  { %v1655_v29 = vrot.slane %v1654_v23, 1 }
 0x300   :  { %v1661_v48 = vrot.slane %v1660_v37, 1 }
 0x301   :  { %v1656_v34 = vadd.f32 %v1655_v29, %v1654_v23 }
 0x302   :  { %v1662_v39 = vadd.f32 %v1661_v48, %v1660_v37 }
 0x303   :  { %2898 = vrcp.f32 %v1656_v34 }
 0x304   :  { %2900 = vrcp.f32 %v1662_v39 }
 0x30d   :  { %v2899_v27 = vpop.eup %2898 }
 0x30e   :  { %v2901_v43 = vpop.eup %2900  ;;  %v1669_v33 = vmul.f32 %v2899_v27, %v2895_v3 }
 0x30f   :  { %v1670_v13 = vmul.f32 %v2901_v43, %v2897_v36 }
 0x310   :  { %v1679_v35 = vmul.f32 %v1675_v40, %v1669_v33 }
 0x311   :  { %v1680_v60 = vmul.f32 %v1676_v8, %v1670_v13 }
 0x312   :  { %2587 = vmatmul.mubr.f32.vlgmr.msra.gmra.mrb[68].mxu1 %v1679_v35 }
 0x313   :  { %2622 = vmatmul.mubr.f32.vlgmr.msra.gmra.mrb[72].mxu0 %v1680_v60 }
 0x3a5   :  { %v1747_v4 = vpop.f32.mrb[66].mxu1 }
 0x3a6   :  { %1751 = vst [vmem:[#allocation13] sm:$0xff] %v1747_v4  ;;  %v1818_v44 = vpop.f32.mrb[70].mxu0  ;;  %v2518_v18 = vpop.f32.mrb[67].mxu1 }
 0x3a7   :  { %1823 = vst [vmem:[#allocation13 + $0x8] sm:$0xff] %v1818_v44  ;;  %v2553_v54 = vpop.f32.mrb[71].mxu0 }
 0x3e5   :  { %v1890_v2 = vpop.f32.mrb[68].mxu1 }
 0x3e6   :  { %1895 = vst [vmem:[#allocation13 + $0x10] sm:$0xff] %v1890_v2  ;;  %v2588_v53 = vpop.f32.mrb[69].mxu1  ;;  %v1962_v25 = vpop.f32.mrb[72].mxu0 }
 0x3e7   :  { %1967 = vst [vmem:[#allocation13 + $0x18] sm:$0xff] %v1962_v25  ;;  %v2623_v50 = vpop.f32.mrb[73].mxu0 }
 0x3e8   :  { %3045 = shalt.err (!%p3042_p10)
}
 0x3e9   :  { %s3046_s12 = scalar_lea.hbm %s3726_s10, 512 }
 0x3ea   :  { %p3047_p11 = scmp.ne.s32.totalorder %s3726_s10, %s3046_s12  ;;  %p3050_p12 = scmp.lt.u32.totalorder %s3046_s12, %s3726_s10 }
 0x3ec   :  { %p3052_p13 = pnand %p3050_p12, %p3047_p11 }
 0x3ee   :  { %3055 = shalt.err (!%p3052_p13)
}
 0x3ef   :  { %s3078_s18 = smov 128   ;;  %s3079_s1 = smov 8  }
 0x3f0   :  { %1979 = dma.vmem_to_hbm [thread:$0]  %s1974_s11, 512, %s3726_s10, [#allocation4], %s3078_s18, %s3078_s18, %s3079_s1  }
 0x3f1   :  { %3064 = dma.done.wait [#allocation4], 512  }
 0x3f2   :  { %3065 = vsyncadd [#allocation4], 4294966784 }
 0x3f3   :  { %1983 = vsyncpa [#allocation3], 1 }
 0x3f4   :  { %1984 = vsyncpa [#allocation6], 1 }
 0x3f5   :  { %1985 = vsyncpa [#allocation9], 1 }
 0x3f6   :  { %1986 = vsyncpa [#allocation12], 1 }
 0x3f7   :  { %1987 = vsyncpa [#allocation4], 1 }

</bundles_post_ra>
